<compile_context>
chip_gen: v7x
topology: tpu7x:2x2x1
jax: 0.10.0
libtpu: 0.0.40
codegen_flags: <defaults>
</compile_context>

<pallas_src>
import functools
import math

import jax
import jax.numpy as jnp
from jax.experimental import pallas as pl
from jax.experimental.pallas import tpu as pltpu


# ----------------------------- kernel helpers ------------------------------

def _layer_norm(x, gamma, beta, eps=1e-6):
    # PyTorch nn.LayerNorm semantics: biased variance, eps inside sqrt.
    mean = jnp.mean(x, axis=-1, keepdims=True)
    var = jnp.mean((x - mean) ** 2, axis=-1, keepdims=True)
    return (x - mean) * jax.lax.rsqrt(var + eps) * gamma + beta


# ------------------------------ fused kernel -------------------------------
# Grid = (B, L).  One grid step = (batch element b, layer l).  The residual
# stream for batch element b lives in the output VMEM block (same block index
# for every l), so activations never round-trip HBM between layers.

def encoder_kernel(x_ref, mask_ref,
                   lng_ref, lnb_ref,
                   wqkv_ref, bqkv_ref, wo_ref, bo_ref,
                   w1_ref, b1_ref, w2_ref, b2_ref,
                   fg_ref, fb_ref,
                   o_ref, *, heads):
    l = pl.program_id(1)
    n_layers = pl.num_programs(1)

    # Seed the resident residual stream from the embedding on layer 0.
    @pl.when(l == 0)
    def _():
        o_ref[...] = x_ref[...]

    x = o_ref[0]                      # (S, D)  f32 residual stream
    mask_add = mask_ref[0]            # (1, S)  f32 additive mask: 0 or -1e18
    g = lng_ref[0]                    # (1, D)
    b = lnb_ref[0]                    # (1, D)

    S, D = x.shape
    H = heads
    dk = D // H

    # ---- self-attention sublayer (pre-norm + residual) ----
    xn = _layer_norm(x, g, b)                       # f32
    xb = xn.astype(jnp.bfloat16)

    # Fused QKV projection: one (S,D)@(D,3D) MXU matmul, f32 accumulation.
    # The 1/sqrt(dk) scale is already folded into the Q slice of wqkv/bqkv.
    qkv = jnp.dot(xb, wqkv_ref[0],
                  preferred_element_type=jnp.float32) + bqkv_ref[0]   # (S,3D)

    # Per-head scores / softmax / context (contraction is intrinsically dk);
    # heads are static lane-slices of the fused qkv result.
    ctx_parts = []
    for h in range(H):
        qh = qkv[:, h * dk:(h + 1) * dk].astype(jnp.bfloat16)
        kh = qkv[:, D + h * dk:D + (h + 1) * dk].astype(jnp.bfloat16)
        vh = qkv[:, 2 * D + h * dk:2 * D + (h + 1) * dk].astype(jnp.bfloat16)

        s = jax.lax.dot_general(qh, kh, (((1,), (1,)), ((), ())),
                                preferred_element_type=jnp.float32)   # (S,S)
        s = s + mask_add                          # mask stays f32
        s = s - jnp.max(s, axis=-1, keepdims=True)
        p = jnp.exp(s)                            # f32
        inv = pl.reciprocal(jnp.sum(p, axis=-1, keepdims=True), approx=True)
        c = jnp.dot(p.astype(jnp.bfloat16), vh,
                    preferred_element_type=jnp.float32) * inv         # (S,dk)
        ctx_parts.append(c)
    ctx = jnp.concatenate(ctx_parts, axis=-1)                          # (S,D)

    # Output projection: one (S,D)@(D,D) matmul (full contraction depth).
    attn_out = jnp.dot(ctx.astype(jnp.bfloat16), wo_ref[0],
                       preferred_element_type=jnp.float32) + bo_ref[0]
    x1 = attn_out + x                              # dropout == identity (eval)

    # ---- feed-forward sublayer (reference reuses att_layer_norm!) ----
    xn2 = _layer_norm(x1, g, b)
    h1 = jnp.dot(xn2.astype(jnp.bfloat16), w1_ref[0],
                 preferred_element_type=jnp.float32) + b1_ref[0]
    h1 = jnp.maximum(h1, 0.0)
    ff = jnp.dot(h1.astype(jnp.bfloat16), w2_ref[0],
                 preferred_element_type=jnp.float32) + b2_ref[0]
    y = ff + x1

    o_ref[0] = y

    # Fused final encoder LayerNorm on the very last layer.
    @pl.when(l == n_layers - 1)
    def _():
        o_ref[0] = _layer_norm(y, fg_ref[...], fb_ref[...])


# --------------------------- setup-time weight prep ------------------------

def prepare_encoder_params(params, heads):
    """One-time weight prep (hoisted out of the forward path): fuse Q/K/V into
    a single (D, 3D) weight, fold the 1/sqrt(dk) scale into the Q slice, stack
    layers on a leading L axis, cast MXU weights to bf16.  LayerNorm params
    and biases stay f32."""
    bf = jnp.bfloat16
    D = params["layers"][0]["wq"].shape[0]
    dk = D // heads
    scale = jnp.float32(1.0 / math.sqrt(dk))

    def stack(fn):
        return jnp.stack([fn(p) for p in params["layers"]], axis=0)

    return dict(
        heads=heads,
        ln_g=stack(lambda p: p["ln_att_g"]),            # (L,1,D)
        ln_b=stack(lambda p: p["ln_att_b"]),
        wqkv=stack(lambda p: jnp.concatenate(
            [p["wq"] * scale, p["wk"], p["wv"]], axis=1)).astype(bf),  # (L,D,3D)
        bqkv=stack(lambda p: jnp.concatenate(
            [p["bq"] * scale, p["bk"], p["bv"]], axis=1)),             # (L,1,3D)
        wo=stack(lambda p: p["wo"]).astype(bf),         # (L,D,D)
        bo=stack(lambda p: p["bo"]),                    # (L,1,D)
        w1=stack(lambda p: p["w1"]).astype(bf),         # (L,D,F)
        b1=stack(lambda p: p["b1"]),                    # (L,1,F)
        w2=stack(lambda p: p["w2"]).astype(bf),         # (L,F,D)
        b2=stack(lambda p: p["b2"]),                    # (L,1,D)
        fin_g=params["ln_g"], fin_b=params["ln_b"],     # (1,D)
    )


def _vmem_limit_bytes():
    # Generation-aware VMEM budget with headroom for double buffers and
    # internal scratch: ~48 MiB on v7x (64 MiB/core), ~96 MiB on v5e/v6e.
    try:
        cap = pltpu.get_tpu_info().vmem_capacity_bytes
        return int(cap * 3 // 4)
    except Exception:
        return None   # fall back to the compiler default


# ------------------------------ full encoder -------------------------------

def transformer_encoder_forward(trans_emb, trans_mask, prep):
    """Mirrors TransformerEncoder.forward(src=None, trans_emb=..., trans_mask=...).

    trans_emb:  (B, S, D) float32, batch-first.
    trans_mask: (B, 1, S) bool, True at padding positions.
    prep:       output of prepare_encoder_params (precomputed once).
    Returns (emb, out, mask, trans_out, trans_mask) like the PyTorch module.
    """
    heads = prep["heads"]
    B, S, D = trans_emb.shape
    L, _, F = prep["w1"].shape

    mask_add = jnp.where(trans_mask, jnp.float32(-1e18), jnp.float32(0.0))

    def act(shape):       # per-batch-element activation block (constant in l)
        return pl.BlockSpec(shape, lambda bi, li: (bi, 0, 0))

    def per_layer(shape):  # per-layer weight block (constant in b)
        return pl.BlockSpec(shape,
                            lambda bi, li: (li,) + (0,) * (len(shape) - 1))

    def const(shape):      # truly constant block
        return pl.BlockSpec(shape, lambda bi, li: (0,) * len(shape))

    in_specs = [
        act((1, S, D)),                                     # trans_emb
        act((1, 1, S)),                                     # additive mask
        per_layer((1, 1, D)), per_layer((1, 1, D)),         # att LN g, b
        per_layer((1, D, 3 * D)), per_layer((1, 1, 3 * D)), # fused Wqkv, bqkv
        per_layer((1, D, D)), per_layer((1, 1, D)),         # Wo, bo
        per_layer((1, D, F)), per_layer((1, 1, F)),         # FFN w1, b1
        per_layer((1, F, D)), per_layer((1, 1, D)),         # FFN w2, b2
        const((1, D)), const((1, D)),                       # final LN g, b
    ]

    compiler_kwargs = dict(dimension_semantics=("parallel", "arbitrary"))
    vlim = _vmem_limit_bytes()
    if vlim is not None:
        compiler_kwargs["vmem_limit_bytes"] = vlim

    out = pl.pallas_call(
        functools.partial(encoder_kernel, heads=heads),
        out_shape=jax.ShapeDtypeStruct((B, S, D), jnp.float32),
        grid=(B, L),
        in_specs=in_specs,
        out_specs=pl.BlockSpec((1, S, D), lambda bi, li: (bi, 0, 0)),
        compiler_params=pltpu.CompilerParams(**compiler_kwargs),
    )(trans_emb, mask_add,
      prep["ln_g"], prep["ln_b"],
      prep["wqkv"], prep["bqkv"], prep["wo"], prep["bo"],
      prep["w1"], prep["b1"], prep["w2"], prep["b2"],
      prep["fin_g"], prep["fin_b"])

    # TODO(synk): folding this transpose into the out_specs needs an (S,1,D)
    # output block whose second-minor dim (1) is neither 8-aligned nor the
    # full batch dim; kept as a cheap XLA transpose instead.
    trans_out = jnp.transpose(out, (1, 0, 2))   # (S, B, D) == .transpose(0,1)
    return None, None, None, trans_out, trans_mask


# --------------------------- pure-JAX reference ----------------------------

def _ref_forward(trans_emb, trans_mask, params, heads):
    mask_add = jnp.where(trans_mask, jnp.float32(-1e18), jnp.float32(0.0))
    x = trans_emb
    B, S, D = x.shape
    dk = D // heads
    for p in params["layers"]:
        g, b = p["ln_att_g"], p["ln_att_b"]
        xn = _layer_norm(x, g, b)
        q = xn @ p["wq"] + p["bq"]
        k = xn @ p["wk"] + p["bk"]
        v = xn @ p["wv"] + p["bv"]
        qh = q.reshape(B, S, heads, dk).transpose(0, 2, 1, 3) / math.sqrt(dk)
        kh = k.reshape(B, S, heads, dk).transpose(0, 2, 1, 3)
        vh = v.reshape(B, S, heads, dk).transpose(0, 2, 1, 3)
        scores = jnp.einsum("bhqd,bhkd->bhqk", qh, kh) + mask_add[:, :, None, :]
        attn = jax.nn.softmax(scores, axis=-1)
        ctx = jnp.einsum("bhqk,bhkd->bhqd", attn, vh)
        ctx = ctx.transpose(0, 2, 1, 3).reshape(B, S, D)
        x = ctx @ p["wo"] + p["bo"] + x
        xn2 = _layer_norm(x, g, b)
        ff = jnp.maximum(xn2 @ p["w1"] + p["b1"], 0.0) @ p["w2"] + p["b2"]
        x = ff + x
    x = _layer_norm(x, params["ln_g"], params["ln_b"])
    return jnp.transpose(x, (1, 0, 2))


# ------------------------------ param builder ------------------------------

def make_params(key, num_layers, d_model, d_ff):
    def dense(k, fan_in, fan_out):
        # Weights stored (in, out); equivalent to torch nn.Linear weight.T.
        return jax.random.normal(k, (fan_in, fan_out), jnp.float32) / math.sqrt(fan_in)

    layers = []
    for _ in range(num_layers):
        keys = jax.random.split(key, 12)
        key = keys[0]
        layers.append(dict(
            ln_att_g=1.0 + 0.1 * jax.random.normal(keys[1], (1, d_model), jnp.float32),
            ln_att_b=0.1 * jax.random.normal(keys[2], (1, d_model), jnp.float32),
            wq=dense(keys[3], d_model, d_model), bq=0.01 * jnp.ones((1, d_model), jnp.float32),
            wk=dense(keys[4], d_model, d_model), bk=0.01 * jnp.ones((1, d_model), jnp.float32),
            wv=dense(keys[5], d_model, d_model), bv=0.01 * jnp.ones((1, d_model), jnp.float32),
            wo=dense(keys[6], d_model, d_model), bo=0.01 * jnp.ones((1, d_model), jnp.float32),
            w1=dense(keys[7], d_model, d_ff), b1=0.01 * jnp.ones((1, d_ff), jnp.float32),
            w2=dense(keys[8], d_ff, d_model), b2=0.01 * jnp.ones((1, d_model), jnp.float32),
        ))
    k1, k2 = jax.random.split(key)
    return dict(
        layers=layers,
        ln_g=1.0 + 0.1 * jax.random.normal(k1, (1, d_model), jnp.float32),
        ln_b=0.1 * jax.random.normal(k2, (1, d_model), jnp.float32),
    )


# ----------------------------------- main -----------------------------------

if __name__ == "__main__":
    # Small but lane-aligned shapes: D multiple of 128, dk = 128.
    B, S, D, H, F, L = 2, 16, 256, 2, 512, 2

    key = jax.random.PRNGKey(0)
    k_emb, k_par = jax.random.split(key)

    trans_emb = jax.random.normal(k_emb, (B, S, D), jnp.float32)
    # Padding mask (B, 1, S): last three positions of batch element 1 are PAD.
    trans_mask = jnp.zeros((B, 1, S), dtype=bool).at[1, 0, S - 3:].set(True)

    params = make_params(k_par, L, D, F)
    prep = prepare_encoder_params(params, H)   # one-time weight prep (hoisted)

    _, _, _, trans_out, _ = transformer_encoder_forward(trans_emb, trans_mask, prep)
    trans_out = jax.block_until_ready(trans_out)

    ref = _ref_forward(trans_emb, trans_mask, params, H)
    assert trans_out.shape == (S, B, D)
    err = float(jnp.max(jnp.abs(trans_out - ref)))
    # bf16 MXU operands + approx reciprocal vs. pure-f32 reference.
    assert jnp.allclose(trans_out, ref, atol=1e-1, rtol=5e-2), (
        f"mismatch vs JAX reference, max abs err {err}")

    print("KERNEL_OK")
</pallas_src>

<mosaic_0001>
module attributes {stable_mosaic.version = 11 : i64} {
  func.func @encoder_kernel(%arg0: i32, %arg1: i32, %arg2: memref<1x16x256xf32, #tpu.memory_space<vmem>>, %arg3: memref<1x1x16xf32, #tpu.memory_space<vmem>>, %arg4: memref<1x1x256xf32, #tpu.memory_space<vmem>>, %arg5: memref<1x1x256xf32, #tpu.memory_space<vmem>>, %arg6: memref<1x256x768xbf16, #tpu.memory_space<vmem>>, %arg7: memref<1x1x768xf32, #tpu.memory_space<vmem>>, %arg8: memref<1x256x256xbf16, #tpu.memory_space<vmem>>, %arg9: memref<1x1x256xf32, #tpu.memory_space<vmem>>, %arg10: memref<1x256x512xbf16, #tpu.memory_space<vmem>>, %arg11: memref<1x1x512xf32, #tpu.memory_space<vmem>>, %arg12: memref<1x512x256xbf16, #tpu.memory_space<vmem>>, %arg13: memref<1x1x256xf32, #tpu.memory_space<vmem>>, %arg14: memref<1x256xf32, #tpu.memory_space<vmem>>, %arg15: memref<1x256xf32, #tpu.memory_space<vmem>>, %arg16: memref<1x16x256xf32, #tpu.memory_space<vmem>>) attributes {dimension_semantics = [#tpu.dimension_semantics<parallel>, #tpu.dimension_semantics<arbitrary>], iteration_bounds = array<i64: 2, 2>, scalar_prefetch = 0 : i64, scratch_operands = 0 : i64, tpu.core_type = #tpu.core_type<tc>, window_params = [{transform_indices = @transform_0, window_bounds = array<i64: 1, 16, 256>}, {transform_indices = @transform_1, window_bounds = array<i64: 1, 1, 16>}, {transform_indices = @transform_2, window_bounds = array<i64: 1, 1, 256>}, {transform_indices = @transform_3, window_bounds = array<i64: 1, 1, 256>}, {transform_indices = @transform_4, window_bounds = array<i64: 1, 256, 768>}, {transform_indices = @transform_5, window_bounds = array<i64: 1, 1, 768>}, {transform_indices = @transform_6, window_bounds = array<i64: 1, 256, 256>}, {transform_indices = @transform_7, window_bounds = array<i64: 1, 1, 256>}, {transform_indices = @transform_8, window_bounds = array<i64: 1, 256, 512>}, {transform_indices = @transform_9, window_bounds = array<i64: 1, 1, 512>}, {transform_indices = @transform_10, window_bounds = array<i64: 1, 512, 256>}, {transform_indices = @transform_11, window_bounds = array<i64: 1, 1, 256>}, {pipeline_mode = #tpu.pipeline_mode<synchronous>, transform_indices = @transform_12, window_bounds = array<i64: 1, 256>}, {pipeline_mode = #tpu.pipeline_mode<synchronous>, transform_indices = @transform_13, window_bounds = array<i64: 1, 256>}, {transform_indices = @transform_14, window_bounds = array<i64: 1, 16, 256>}]} {
    %c0_i32 = arith.constant 0 : i32
    %0 = arith.cmpi eq, %arg1, %c0_i32 : i32
    %1 = arith.extui %0 : i1 to i32
    %c0_i32_0 = arith.constant 0 : i32
    %2 = arith.cmpi ne, %1, %c0_i32_0 : i32
    scf.if %2 {
      %c0_62 = arith.constant 0 : index
      %c0_63 = arith.constant 0 : index
      %c0_64 = arith.constant 0 : index
      %140 = vector.load %arg2[%c0_62, %c0_63, %c0_64] : memref<1x16x256xf32, #tpu.memory_space<vmem>>, vector<1x16x256xf32>
      %c0_65 = arith.constant 0 : index
      %c0_66 = arith.constant 0 : index
      %c0_67 = arith.constant 0 : index
      %141 = vector.load %arg16[%c0_65, %c0_66, %c0_67] : memref<1x16x256xf32, #tpu.memory_space<vmem>>, vector<1x16x256xf32>
      tpu.vector_store %arg16[%c0_65, %c0_66, %c0_67], %140 {strides = array<i32>} : memref<1x16x256xf32, #tpu.memory_space<vmem>>, vector<1x16x256xf32>,
    } else {
    }
    %c0 = arith.constant 0 : index
    %c0_1 = arith.constant 0 : index
    %c0_2 = arith.constant 0 : index
    %3 = vector.load %arg16[%c0, %c0_1, %c0_2] : memref<1x16x256xf32, #tpu.memory_space<vmem>>, vector<1x16x256xf32>
    %4 = vector.shape_cast %3 : vector<1x16x256xf32> to vector<16x256xf32>
    %c0_3 = arith.constant 0 : index
    %c0_4 = arith.constant 0 : index
    %c0_5 = arith.constant 0 : index
    %5 = vector.load %arg3[%c0_3, %c0_4, %c0_5] : memref<1x1x16xf32, #tpu.memory_space<vmem>>, vector<1x1x16xf32>
    %6 = vector.shape_cast %5 : vector<1x1x16xf32> to vector<1x16xf32>
    %c0_6 = arith.constant 0 : index
    %c0_7 = arith.constant 0 : index
    %c0_8 = arith.constant 0 : index
    %7 = vector.load %arg4[%c0_6, %c0_7, %c0_8] : memref<1x1x256xf32, #tpu.memory_space<vmem>>, vector<1x1x256xf32>
    %8 = vector.shape_cast %7 : vector<1x1x256xf32> to vector<1x256xf32>
    %c0_9 = arith.constant 0 : index
    %c0_10 = arith.constant 0 : index
    %c0_11 = arith.constant 0 : index
    %9 = vector.load %arg5[%c0_9, %c0_10, %c0_11] : memref<1x1x256xf32, #tpu.memory_space<vmem>>, vector<1x1x256xf32>
    %10 = vector.shape_cast %9 : vector<1x1x256xf32> to vector<1x256xf32>
    %cst = arith.constant dense<0.000000e+00> : vector<16xf32>
    %11 = vector.multi_reduction <add>, %4, %cst [1] : vector<16x256xf32> to vector<16xf32>
    %12 = vector.shape_cast %11 : vector<16xf32> to vector<16x1xf32>
    %cst_12 = arith.constant 2.560000e+02 : f32
    %13 = vector.broadcast %cst_12 : f32 to vector<16x1xf32>
    %14 = arith.divf %12, %13 : vector<16x1xf32>
    %15 = vector.broadcast %14 : vector<16x1xf32> to vector<16x256xf32>
    %16 = arith.subf %4, %15 : vector<16x256xf32>
    %17 = arith.mulf %16, %16 : vector<16x256xf32>
    %cst_13 = arith.constant dense<0.000000e+00> : vector<16xf32>
    %18 = vector.multi_reduction <add>, %17, %cst_13 [1] : vector<16x256xf32> to vector<16xf32>
    %19 = vector.shape_cast %18 : vector<16xf32> to vector<16x1xf32>
    %cst_14 = arith.constant 2.560000e+02 : f32
    %20 = vector.broadcast %cst_14 : f32 to vector<16x1xf32>
    %21 = arith.divf %19, %20 : vector<16x1xf32>
    %22 = vector.broadcast %14 : vector<16x1xf32> to vector<16x256xf32>
    %23 = arith.subf %4, %22 : vector<16x256xf32>
    %cst_15 = arith.constant 9.99999997E-7 : f32
    %24 = vector.broadcast %cst_15 : f32 to vector<16x1xf32>
    %25 = arith.addf %21, %24 : vector<16x1xf32>
    %26 = math.rsqrt %25 : vector<16x1xf32>
    %27 = vector.broadcast %26 : vector<16x1xf32> to vector<16x256xf32>
    %28 = arith.mulf %23, %27 : vector<16x256xf32>
    %29 = vector.broadcast %8 : vector<1x256xf32> to vector<16x256xf32>
    %30 = arith.mulf %28, %29 : vector<16x256xf32>
    %31 = vector.broadcast %10 : vector<1x256xf32> to vector<16x256xf32>
    %32 = arith.addf %30, %31 : vector<16x256xf32>
    %33 = arith.truncf %32 : vector<16x256xf32> to vector<16x256xbf16>
    %c0_16 = arith.constant 0 : index
    %c0_17 = arith.constant 0 : index
    %c0_18 = arith.constant 0 : index
    %34 = vector.load %arg6[%c0_16, %c0_17, %c0_18] : memref<1x256x768xbf16, #tpu.memory_space<vmem>>, vector<1x256x768xbf16>
    %35 = vector.shape_cast %34 : vector<1x256x768xbf16> to vector<256x768xbf16>
    %cst_19 = arith.constant dense<0.000000e+00> : vector<16x768xf32>
    %36 = tpu.matmul %33, %35, %cst_19 {dimension_numbers = #tpu.dot_dimension_numbers<[1], [0], [0], [1], [0, 0, 1, 1], [], []>} : vector<16x256xbf16>, vector<256x768xbf16>, vector<16x768xf32> -> vector<16x768xf32>
    %c0_20 = arith.constant 0 : index
    %c0_21 = arith.constant 0 : index
    %c0_22 = arith.constant 0 : index
    %37 = vector.load %arg7[%c0_20, %c0_21, %c0_22] : memref<1x1x768xf32, #tpu.memory_space<vmem>>, vector<1x1x768xf32>
    %38 = vector.shape_cast %37 : vector<1x1x768xf32> to vector<1x768xf32>
    %39 = vector.broadcast %38 : vector<1x768xf32> to vector<16x768xf32>
    %40 = arith.addf %36, %39 : vector<16x768xf32>
    %41 = vector.extract_strided_slice %40 {offsets = [0, 0], sizes = [16, 128], strides = [1, 1]} : vector<16x768xf32> to vector<16x128xf32>
    %42 = arith.truncf %41 : vector<16x128xf32> to vector<16x128xbf16>
    %43 = vector.extract_strided_slice %40 {offsets = [0, 256], sizes = [16, 128], strides = [1, 1]} : vector<16x768xf32> to vector<16x128xf32>
    %44 = arith.truncf %43 : vector<16x128xf32> to vector<16x128xbf16>
    %45 = vector.extract_strided_slice %40 {offsets = [0, 512], sizes = [16, 128], strides = [1, 1]} : vector<16x768xf32> to vector<16x128xf32>
    %46 = arith.truncf %45 : vector<16x128xf32> to vector<16x128xbf16>
    %cst_23 = arith.constant dense<0.000000e+00> : vector<16x16xf32>
    %47 = tpu.matmul %42, %44, %cst_23 {dimension_numbers = #tpu.dot_dimension_numbers<[1], [1], [0], [0], [0, 0, 1, 0], [], []>} : vector<16x128xbf16>, vector<16x128xbf16>, vector<16x16xf32> -> vector<16x16xf32>
    %48 = vector.broadcast %6 : vector<1x16xf32> to vector<16x16xf32>
    %49 = arith.addf %47, %48 : vector<16x16xf32>
    %cst_24 = arith.constant dense<0xFF800000> : vector<16xf32>
    %50 = vector.multi_reduction <maximumf>, %49, %cst_24 [1] : vector<16x16xf32> to vector<16xf32>
    %51 = vector.shape_cast %50 : vector<16xf32> to vector<16x1xf32>
    %52 = vector.broadcast %51 : vector<16x1xf32> to vector<16x16xf32>
    %53 = arith.subf %49, %52 : vector<16x16xf32>
    %54 = math.exp %53 : vector<16x16xf32>
    %cst_25 = arith.constant dense<0.000000e+00> : vector<16xf32>
    %55 = vector.multi_reduction <add>, %54, %cst_25 [1] : vector<16x16xf32> to vector<16xf32>
    %56 = vector.shape_cast %55 : vector<16xf32> to vector<16x1xf32>
    %57 = tpu.reciprocal %56 {approx = true} : vector<16x1xf32> -> vector<16x1xf32>
    %58 = arith.truncf %54 : vector<16x16xf32> to vector<16x16xbf16>
    %cst_26 = arith.constant dense<0.000000e+00> : vector<16x128xf32>
    %59 = tpu.matmul %58, %46, %cst_26 {dimension_numbers = #tpu.dot_dimension_numbers<[1], [0], [0], [1], [0, 0, 1, 1], [], []>} : vector<16x16xbf16>, vector<16x128xbf16>, vector<16x128xf32> -> vector<16x128xf32>
    %60 = vector.broadcast %57 : vector<16x1xf32> to vector<16x128xf32>
    %61 = arith.mulf %59, %60 : vector<16x128xf32>
    %62 = vector.extract_strided_slice %40 {offsets = [0, 128], sizes = [16, 128], strides = [1, 1]} : vector<16x768xf32> to vector<16x128xf32>
    %63 = arith.truncf %62 : vector<16x128xf32> to vector<16x128xbf16>
    %64 = vector.extract_strided_slice %40 {offsets = [0, 384], sizes = [16, 128], strides = [1, 1]} : vector<16x768xf32> to vector<16x128xf32>
    %65 = arith.truncf %64 : vector<16x128xf32> to vector<16x128xbf16>
    %66 = vector.extract_strided_slice %40 {offsets = [0, 640], sizes = [16, 128], strides = [1, 1]} : vector<16x768xf32> to vector<16x128xf32>
    %67 = arith.truncf %66 : vector<16x128xf32> to vector<16x128xbf16>
    %cst_27 = arith.constant dense<0.000000e+00> : vector<16x16xf32>
    %68 = tpu.matmul %63, %65, %cst_27 {dimension_numbers = #tpu.dot_dimension_numbers<[1], [1], [0], [0], [0, 0, 1, 0], [], []>} : vector<16x128xbf16>, vector<16x128xbf16>, vector<16x16xf32> -> vector<16x16xf32>
    %69 = vector.broadcast %6 : vector<1x16xf32> to vector<16x16xf32>
    %70 = arith.addf %68, %69 : vector<16x16xf32>
    %cst_28 = arith.constant dense<0xFF800000> : vector<16xf32>
    %71 = vector.multi_reduction <maximumf>, %70, %cst_28 [1] : vector<16x16xf32> to vector<16xf32>
    %72 = vector.shape_cast %71 : vector<16xf32> to vector<16x1xf32>
    %73 = vector.broadcast %72 : vector<16x1xf32> to vector<16x16xf32>
    %74 = arith.subf %70, %73 : vector<16x16xf32>
    %75 = math.exp %74 : vector<16x16xf32>
    %cst_29 = arith.constant dense<0.000000e+00> : vector<16xf32>
    %76 = vector.multi_reduction <add>, %75, %cst_29 [1] : vector<16x16xf32> to vector<16xf32>
    %77 = vector.shape_cast %76 : vector<16xf32> to vector<16x1xf32>
    %78 = tpu.reciprocal %77 {approx = true} : vector<16x1xf32> -> vector<16x1xf32>
    %79 = arith.truncf %75 : vector<16x16xf32> to vector<16x16xbf16>
    %cst_30 = arith.constant dense<0.000000e+00> : vector<16x128xf32>
    %80 = tpu.matmul %79, %67, %cst_30 {dimension_numbers = #tpu.dot_dimension_numbers<[1], [0], [0], [1], [0, 0, 1, 1], [], []>} : vector<16x16xbf16>, vector<16x128xbf16>, vector<16x128xf32> -> vector<16x128xf32>
    %81 = vector.broadcast %78 : vector<16x1xf32> to vector<16x128xf32>
    %82 = arith.mulf %80, %81 : vector<16x128xf32>
    %83 = tpu.concatenate %61, %82 in 1 : vector<16x128xf32>, vector<16x128xf32> -> vector<16x256xf32>
    %84 = arith.truncf %83 : vector<16x256xf32> to vector<16x256xbf16>
    %c0_31 = arith.constant 0 : index
    %c0_32 = arith.constant 0 : index
    %c0_33 = arith.constant 0 : index
    %85 = vector.load %arg8[%c0_31, %c0_32, %c0_33] : memref<1x256x256xbf16, #tpu.memory_space<vmem>>, vector<1x256x256xbf16>
    %86 = vector.shape_cast %85 : vector<1x256x256xbf16> to vector<256x256xbf16>
    %cst_34 = arith.constant dense<0.000000e+00> : vector<16x256xf32>
    %87 = tpu.matmul %84, %86, %cst_34 {dimension_numbers = #tpu.dot_dimension_numbers<[1], [0], [0], [1], [0, 0, 1, 1], [], []>} : vector<16x256xbf16>, vector<256x256xbf16>, vector<16x256xf32> -> vector<16x256xf32>
    %c0_35 = arith.constant 0 : index
    %c0_36 = arith.constant 0 : index
    %c0_37 = arith.constant 0 : index
    %88 = vector.load %arg9[%c0_35, %c0_36, %c0_37] : memref<1x1x256xf32, #tpu.memory_space<vmem>>, vector<1x1x256xf32>
    %89 = vector.shape_cast %88 : vector<1x1x256xf32> to vector<1x256xf32>
    %90 = vector.broadcast %89 : vector<1x256xf32> to vector<16x256xf32>
    %91 = arith.addf %87, %90 : vector<16x256xf32>
    %92 = arith.addf %91, %4 : vector<16x256xf32>
    %cst_38 = arith.constant dense<0.000000e+00> : vector<16xf32>
    %93 = vector.multi_reduction <add>, %92, %cst_38 [1] : vector<16x256xf32> to vector<16xf32>
    %94 = vector.shape_cast %93 : vector<16xf32> to vector<16x1xf32>
    %cst_39 = arith.constant 2.560000e+02 : f32
    %95 = vector.broadcast %cst_39 : f32 to vector<16x1xf32>
    %96 = arith.divf %94, %95 : vector<16x1xf32>
    %97 = vector.broadcast %96 : vector<16x1xf32> to vector<16x256xf32>
    %98 = arith.subf %92, %97 : vector<16x256xf32>
    %99 = arith.mulf %98, %98 : vector<16x256xf32>
    %cst_40 = arith.constant dense<0.000000e+00> : vector<16xf32>
    %100 = vector.multi_reduction <add>, %99, %cst_40 [1] : vector<16x256xf32> to vector<16xf32>
    %101 = vector.shape_cast %100 : vector<16xf32> to vector<16x1xf32>
    %cst_41 = arith.constant 2.560000e+02 : f32
    %102 = vector.broadcast %cst_41 : f32 to vector<16x1xf32>
    %103 = arith.divf %101, %102 : vector<16x1xf32>
    %104 = vector.broadcast %96 : vector<16x1xf32> to vector<16x256xf32>
    %105 = arith.subf %92, %104 : vector<16x256xf32>
    %cst_42 = arith.constant 9.99999997E-7 : f32
    %106 = vector.broadcast %cst_42 : f32 to vector<16x1xf32>
    %107 = arith.addf %103, %106 : vector<16x1xf32>
    %108 = math.rsqrt %107 : vector<16x1xf32>
    %109 = vector.broadcast %108 : vector<16x1xf32> to vector<16x256xf32>
    %110 = arith.mulf %105, %109 : vector<16x256xf32>
    %111 = vector.broadcast %8 : vector<1x256xf32> to vector<16x256xf32>
    %112 = arith.mulf %110, %111 : vector<16x256xf32>
    %113 = vector.broadcast %10 : vector<1x256xf32> to vector<16x256xf32>
    %114 = arith.addf %112, %113 : vector<16x256xf32>
    %115 = arith.truncf %114 : vector<16x256xf32> to vector<16x256xbf16>
    %c0_43 = arith.constant 0 : index
    %c0_44 = arith.constant 0 : index
    %c0_45 = arith.constant 0 : index
    %116 = vector.load %arg10[%c0_43, %c0_44, %c0_45] : memref<1x256x512xbf16, #tpu.memory_space<vmem>>, vector<1x256x512xbf16>
    %117 = vector.shape_cast %116 : vector<1x256x512xbf16> to vector<256x512xbf16>
    %cst_46 = arith.constant dense<0.000000e+00> : vector<16x512xf32>
    %118 = tpu.matmul %115, %117, %cst_46 {dimension_numbers = #tpu.dot_dimension_numbers<[1], [0], [0], [1], [0, 0, 1, 1], [], []>} : vector<16x256xbf16>, vector<256x512xbf16>, vector<16x512xf32> -> vector<16x512xf32>
    %c0_47 = arith.constant 0 : index
    %c0_48 = arith.constant 0 : index
    %c0_49 = arith.constant 0 : index
    %119 = vector.load %arg11[%c0_47, %c0_48, %c0_49] : memref<1x1x512xf32, #tpu.memory_space<vmem>>, vector<1x1x512xf32>
    %120 = vector.shape_cast %119 : vector<1x1x512xf32> to vector<1x512xf32>
    %121 = vector.broadcast %120 : vector<1x512xf32> to vector<16x512xf32>
    %122 = arith.addf %118, %121 : vector<16x512xf32>
    %cst_50 = arith.constant 0.000000e+00 : f32
    %123 = vector.broadcast %cst_50 : f32 to vector<16x512xf32>
    %124 = arith.maximumf %122, %123 : vector<16x512xf32>
    %125 = arith.truncf %124 : vector<16x512xf32> to vector<16x512xbf16>
    %c0_51 = arith.constant 0 : index
    %c0_52 = arith.constant 0 : index
    %c0_53 = arith.constant 0 : index
    %126 = vector.load %arg12[%c0_51, %c0_52, %c0_53] : memref<1x512x256xbf16, #tpu.memory_space<vmem>>, vector<1x512x256xbf16>
    %127 = vector.shape_cast %126 : vector<1x512x256xbf16> to vector<512x256xbf16>
    %cst_54 = arith.constant dense<0.000000e+00> : vector<16x256xf32>
    %128 = tpu.matmul %125, %127, %cst_54 {dimension_numbers = #tpu.dot_dimension_numbers<[1], [0], [0], [1], [0, 0, 1, 1], [], []>} : vector<16x512xbf16>, vector<512x256xbf16>, vector<16x256xf32> -> vector<16x256xf32>
    %c0_55 = arith.constant 0 : index
    %c0_56 = arith.constant 0 : index
    %c0_57 = arith.constant 0 : index
    %129 = vector.load %arg13[%c0_55, %c0_56, %c0_57] : memref<1x1x256xf32, #tpu.memory_space<vmem>>, vector<1x1x256xf32>
    %130 = vector.shape_cast %129 : vector<1x1x256xf32> to vector<1x256xf32>
    %131 = vector.broadcast %130 : vector<1x256xf32> to vector<16x256xf32>
    %132 = arith.addf %128, %131 : vector<16x256xf32>
    %133 = arith.addf %132, %92 : vector<16x256xf32>
    %c0_58 = arith.constant 0 : index
    %c0_59 = arith.constant 0 : index
    %c0_60 = arith.constant 0 : index
    %134 = vector.load %arg16[%c0_58, %c0_59, %c0_60] : memref<1x16x256xf32, #tpu.memory_space<vmem>>, vector<1x16x256xf32>
    %135 = vector.shape_cast %134 : vector<1x16x256xf32> to vector<16x256xf32>
    %136 = vector.shape_cast %133 : vector<16x256xf32> to vector<1x16x256xf32>
    tpu.vector_store %arg16[%c0_58, %c0_59, %c0_60], %136 {strides = array<i32>} : memref<1x16x256xf32, #tpu.memory_space<vmem>>, vector<1x16x256xf32>,
    %c1_i32 = arith.constant 1 : i32
    %137 = arith.cmpi eq, %arg1, %c1_i32 : i32
    %138 = arith.extui %137 : i1 to i32
    %c0_i32_61 = arith.constant 0 : i32
    %139 = arith.cmpi ne, %138, %c0_i32_61 : i32
    scf.if %139 {
      %c0_62 = arith.constant 0 : index
      %c0_63 = arith.constant 0 : index
      %140 = vector.load %arg14[%c0_62, %c0_63] : memref<1x256xf32, #tpu.memory_space<vmem>>, vector<1x256xf32>
      %c0_64 = arith.constant 0 : index
      %c0_65 = arith.constant 0 : index
      %141 = vector.load %arg15[%c0_64, %c0_65] : memref<1x256xf32, #tpu.memory_space<vmem>>, vector<1x256xf32>
      %cst_66 = arith.constant dense<0.000000e+00> : vector<16xf32>
      %142 = vector.multi_reduction <add>, %133, %cst_66 [1] : vector<16x256xf32> to vector<16xf32>
      %143 = vector.shape_cast %142 : vector<16xf32> to vector<16x1xf32>
      %cst_67 = arith.constant 2.560000e+02 : f32
      %144 = vector.broadcast %cst_67 : f32 to vector<16x1xf32>
      %145 = arith.divf %143, %144 : vector<16x1xf32>
      %146 = vector.broadcast %145 : vector<16x1xf32> to vector<16x256xf32>
      %147 = arith.subf %133, %146 : vector<16x256xf32>
      %148 = arith.mulf %147, %147 : vector<16x256xf32>
      %cst_68 = arith.constant dense<0.000000e+00> : vector<16xf32>
      %149 = vector.multi_reduction <add>, %148, %cst_68 [1] : vector<16x256xf32> to vector<16xf32>
      %150 = vector.shape_cast %149 : vector<16xf32> to vector<16x1xf32>
      %cst_69 = arith.constant 2.560000e+02 : f32
      %151 = vector.broadcast %cst_69 : f32 to vector<16x1xf32>
      %152 = arith.divf %150, %151 : vector<16x1xf32>
      %153 = vector.broadcast %145 : vector<16x1xf32> to vector<16x256xf32>
      %154 = arith.subf %133, %153 : vector<16x256xf32>
      %cst_70 = arith.constant 9.99999997E-7 : f32
      %155 = vector.broadcast %cst_70 : f32 to vector<16x1xf32>
      %156 = arith.addf %152, %155 : vector<16x1xf32>
      %157 = math.rsqrt %156 : vector<16x1xf32>
      %158 = vector.broadcast %157 : vector<16x1xf32> to vector<16x256xf32>
      %159 = arith.mulf %154, %158 : vector<16x256xf32>
      %160 = vector.broadcast %140 : vector<1x256xf32> to vector<16x256xf32>
      %161 = arith.mulf %159, %160 : vector<16x256xf32>
      %162 = vector.broadcast %141 : vector<1x256xf32> to vector<16x256xf32>
      %163 = arith.addf %161, %162 : vector<16x256xf32>
      %c0_71 = arith.constant 0 : index
      %c0_72 = arith.constant 0 : index
      %c0_73 = arith.constant 0 : index
      %164 = vector.load %arg16[%c0_71, %c0_72, %c0_73] : memref<1x16x256xf32, #tpu.memory_space<vmem>>, vector<1x16x256xf32>
      %165 = vector.shape_cast %164 : vector<1x16x256xf32> to vector<16x256xf32>
      %166 = vector.shape_cast %163 : vector<16x256xf32> to vector<1x16x256xf32>
      tpu.vector_store %arg16[%c0_71, %c0_72, %c0_73], %166 {strides = array<i32>} : memref<1x16x256xf32, #tpu.memory_space<vmem>>, vector<1x16x256xf32>,
    } else {
    }
    return
  }
  func.func @transform_0(%arg0: i32, %arg1: i32) -> (i32, i32, i32) {
    %c0_i32 = arith.constant 0 : i32
    %c0_i32_0 = arith.constant 0 : i32
    %c0_i32_1 = arith.constant 0 : i32
    return %arg0, %c0_i32, %c0_i32_0 : i32, i32, i32
  }
  func.func @transform_1(%arg0: i32, %arg1: i32) -> (i32, i32, i32) {
    %c0_i32 = arith.constant 0 : i32
    %c0_i32_0 = arith.constant 0 : i32
    %c0_i32_1 = arith.constant 0 : i32
    return %arg0, %c0_i32, %c0_i32_0 : i32, i32, i32
  }
  func.func @transform_2(%arg0: i32, %arg1: i32) -> (i32, i32, i32) {
    %c0_i32 = arith.constant 0 : i32
    %c0_i32_0 = arith.constant 0 : i32
    %c0_i32_1 = arith.constant 0 : i32
    return %arg1, %c0_i32, %c0_i32_0 : i32, i32, i32
  }
  func.func @transform_3(%arg0: i32, %arg1: i32) -> (i32, i32, i32) {
    %c0_i32 = arith.constant 0 : i32
    %c0_i32_0 = arith.constant 0 : i32
    %c0_i32_1 = arith.constant 0 : i32
    return %arg1, %c0_i32, %c0_i32_0 : i32, i32, i32
  }
  func.func @transform_4(%arg0: i32, %arg1: i32) -> (i32, i32, i32) {
    %c0_i32 = arith.constant 0 : i32
    %c0_i32_0 = arith.constant 0 : i32
    %c0_i32_1 = arith.constant 0 : i32
    return %arg1, %c0_i32, %c0_i32_0 : i32, i32, i32
  }
  func.func @transform_5(%arg0: i32, %arg1: i32) -> (i32, i32, i32) {
    %c0_i32 = arith.constant 0 : i32
    %c0_i32_0 = arith.constant 0 : i32
    %c0_i32_1 = arith.constant 0 : i32
    return %arg1, %c0_i32, %c0_i32_0 : i32, i32, i32
  }
  func.func @transform_6(%arg0: i32, %arg1: i32) -> (i32, i32, i32) {
    %c0_i32 = arith.constant 0 : i32
    %c0_i32_0 = arith.constant 0 : i32
    %c0_i32_1 = arith.constant 0 : i32
    return %arg1, %c0_i32, %c0_i32_0 : i32, i32, i32
  }
  func.func @transform_7(%arg0: i32, %arg1: i32) -> (i32, i32, i32) {
    %c0_i32 = arith.constant 0 : i32
    %c0_i32_0 = arith.constant 0 : i32
    %c0_i32_1 = arith.constant 0 : i32
    return %arg1, %c0_i32, %c0_i32_0 : i32, i32, i32
  }
  func.func @transform_8(%arg0: i32, %arg1: i32) -> (i32, i32, i32) {
    %c0_i32 = arith.constant 0 : i32
    %c0_i32_0 = arith.constant 0 : i32
    %c0_i32_1 = arith.constant 0 : i32
    return %arg1, %c0_i32, %c0_i32_0 : i32, i32, i32
  }
  func.func @transform_9(%arg0: i32, %arg1: i32) -> (i32, i32, i32) {
    %c0_i32 = arith.constant 0 : i32
    %c0_i32_0 = arith.constant 0 : i32
    %c0_i32_1 = arith.constant 0 : i32
    return %arg1, %c0_i32, %c0_i32_0 : i32, i32, i32
  }
  func.func @transform_10(%arg0: i32, %arg1: i32) -> (i32, i32, i32) {
    %c0_i32 = arith.constant 0 : i32
    %c0_i32_0 = arith.constant 0 : i32
    %c0_i32_1 = arith.constant 0 : i32
    return %arg1, %c0_i32, %c0_i32_0 : i32, i32, i32
  }
  func.func @transform_11(%arg0: i32, %arg1: i32) -> (i32, i32, i32) {
    %c0_i32 = arith.constant 0 : i32
    %c0_i32_0 = arith.constant 0 : i32
    %c0_i32_1 = arith.constant 0 : i32
    return %arg1, %c0_i32, %c0_i32_0 : i32, i32, i32
  }
  func.func @transform_12(%arg0: i32, %arg1: i32) -> (i32, i32) {
    %c0_i32 = arith.constant 0 : i32
    %c0_i32_0 = arith.constant 0 : i32
    %c0_i32_1 = arith.constant 0 : i32
    return %c0_i32, %c0_i32_0 : i32, i32
  }
  func.func @transform_13(%arg0: i32, %arg1: i32) -> (i32, i32) {
    %c0_i32 = arith.constant 0 : i32
    %c0_i32_0 = arith.constant 0 : i32
    %c0_i32_1 = arith.constant 0 : i32
    return %c0_i32, %c0_i32_0 : i32, i32
  }
  func.func @transform_14(%arg0: i32, %arg1: i32) -> (i32, i32, i32) {
    %c0_i32 = arith.constant 0 : i32
    %c0_i32_0 = arith.constant 0 : i32
    %c0_i32_1 = arith.constant 0 : i32
    return %arg0, %c0_i32, %c0_i32_0 : i32, i32, i32
  }
}

</mosaic_0001>

<bundles_post_ra>
// kernel: tpu_custom_call.1
= control target key start
LH: loop header
LB: loop body
LE: loop exit
PB: predicated region body
PF: predicated region fallthrough
CT: control target
= control target key end

     0   :  { %s5862_s0 = inlined_call_operand.hbm [shape: f32[2,16,256], index: 0, kind: input, shape index: {}]   ;;  %s5863_s1 = inlined_call_operand.vmem [shape: f32[2,1,16], index: 1, kind: input, shape index: {}]   ;;  %s5864_s2 = inlined_call_operand.hbm [shape: f32[2,1,256], index: 2, kind: input, shape index: {}]   ;;  %s5865_s3 = inlined_call_operand.hbm [shape: f32[2,1,256], index: 3, kind: input, shape index: {}]   ;;  %s5866_s4 = inlined_call_operand.hbm [shape: bf16[2,256,768], index: 4, kind: input, shape index: {}]   ;;  %s5867_s5 = inlined_call_operand.vmem [shape: f32[2,1,768], index: 5, kind: input, shape index: {}]   ;;  %s5868_s6 = inlined_call_operand.hbm [shape: bf16[2,256,256], index: 6, kind: input, shape index: {}]   ;;  %s5869_s7 = inlined_call_operand.vmem [shape: f32[2,1,256], index: 7, kind: input, shape index: {}]   ;;  %s5870_s8 = inlined_call_operand.hbm [shape: bf16[2,256,512], index: 8, kind: input, shape index: {}]   ;;  %s5871_s9 = inlined_call_operand.vmem [shape: f32[2,1,512], index: 9, kind: input, shape index: {}]   ;;  %s5872_s10 = inlined_call_operand.hbm [shape: bf16[2,512,256], index: 10, kind: input, shape index: {}]   ;;  %s5873_s11 = inlined_call_operand.vmem [shape: f32[2,1,256], index: 11, kind: input, shape index: {}]   ;;  %s5874_s12 = inlined_call_operand.vmem [shape: f32[1,256], index: 12, kind: input, shape index: {}]   ;;  %s5875_s13 = inlined_call_operand.vmem [shape: f32[1,256], index: 13, kind: input, shape index: {}]   ;;  %s5876_s14 = inlined_call_operand.hbm [shape: f32[2,16,256], index: 14, kind: output, shape index: {}]  }
   0x1   :  { %5916 = sst [smem:[#allocation38_spill]] %s5862_s0 }
   0x2   :  { %5917 = sst [smem:[#allocation39_spill]] %s5863_s1 }
   0x3   :  { %5918 = sst [smem:[#allocation40_spill]] %s5864_s2 }
   0x4   :  { %5919 = sst [smem:[#allocation41_spill]] %s5865_s3 }
   0x5   :  { %5920 = sst [smem:[#allocation42_spill]] %s5866_s4 }
   0x6   :  { %5921 = sst [smem:[#allocation43_spill]] %s5867_s5 }
   0x7   :  { %5922 = sst [smem:[#allocation44_spill]] %s5868_s6 }
   0x8   :  { %5923 = sst [smem:[#allocation45_spill]] %s5869_s7 }
   0x9   :  { %5924 = sst [smem:[#allocation46_spill]] %s5870_s8 }
   0xa   :  { %5925 = sst [smem:[#allocation47_spill]] %s5871_s9 }
   0xb   :  { %5926 = sst [smem:[#allocation48_spill]] %s5872_s10 }
   0xc   :  { %5927 = sst [smem:[#allocation49_spill]] %s5873_s11 }
   0xd   :  { %5928 = sst [smem:[#allocation50_spill]] %s5874_s12 }
   0xe   :  { %5929 = sst [smem:[#allocation51_spill]] %s5875_s13 }
   0xf   :  { %5930 = sst [smem:[#allocation52_spill]] %s5876_s14 }
  0x10   :  { %19 = vsyncpa [#allocation3], 0 }
  0x11   :  { %21 = vsyncpa [#allocation3 + $0x1], 0 }
  0x12   :  { %22 = vsyncpa [#allocation6], 0 }
  0x13   :  { %24 = vsyncpa [#allocation6 + $0x1], 0 }
  0x14   :  { %25 = vsyncpa [#allocation9], 0 }
  0x15   :  { %27 = vsyncpa [#allocation9 + $0x1], 0 }
  0x16   :  { %28 = vsyncpa [#allocation12], 0 }
  0x17   :  { %30 = vsyncpa [#allocation12 + $0x1], 0 }
  0x18   :  { %31 = vsyncpa [#allocation4], 0 }
  0x19   :  { %33 = vsyncpa [#allocation4 + $0x1], 0  ;;  %s4851_s29 = smov 0   ;;  %s4853_s30 = smov 0  }
  0x1a   :  { %s4855_s15 = smov 0   ;;  %s4857_s16 = smov 0  }
  0x1b   :  { %s4859_s17 = smov 0   ;;  %s4861_s18 = smov 0  }
  0x1c   :  { %s4863_s19 = smov 0   ;;  %s4865_s20 = smov 0  }
  0x1d   :  { %s4867_s21 = smov 0   ;;  %s4869_s22 = smov 0  }
  0x1e   :  { %s4871_s23 = smov 0  }
  0x1f LB: > { %5931 = sst [smem:[#allocation20_spill]] %s4720_s30  ;;  %s4905_s24 = sadd.s32 4294967295, %s4756_s23   ;;  %s4756_s23 = sphi %s4871_s23, %s39_s23   ;;  %s4752_s22 = sphi %s4869_s22, %s6015_s22   ;;  %s4748_s21 = sphi %s4867_s21, %s6014_s21   ;;  %s4744_s20 = sphi %s4865_s20, %s6013_s20   ;;  %s4740_s19 = sphi %s4863_s19, %s6012_s19   ;;  %s4736_s18 = sphi %s4861_s18, %s6011_s18   ;;  %s4732_s17 = sphi %s4859_s17, %s6010_s17   ;;  %s4728_s16 = sphi %s4857_s16, %s6009_s16   ;;  %s4724_s15 = sphi %s4855_s15, %s6008_s15   ;;  %s4720_s30 = sphi %s4853_s30, %s6007_s30   ;;  %s4716_s29 = sphi %s4851_s29, %s6006_s29  }
  0x20   : > { %5932 = sst [smem:[#allocation21_spill]] %s4724_s15  ;;  %s48_s25 = sadd.s32 1, %s4748_s21 }
  0x21   : > { %5933 = sst [smem:[#allocation22_spill]] %s4728_s16  ;;  %p4908_p0 = scmp.ge.s32.totalorder %s48_s25, 2 }
  0x22   : > { %5934 = sst [smem:[#allocation23_spill]] %s4732_s17  ;;  %p5887_p1 = scmp.eq.s32.totalorder %s4756_s23, 0 }
  0x23   : > { %5935 = sst [smem:[#allocation24_spill]] %s4736_s18  ;;  %p5886_p2 = scmp.eq.s32.totalorder %s4905_s24, 0 }
  0x24   : > { %5936 = sst [smem:[#allocation25_spill]] %s4740_s19  ;;  %s110_s27 = sadd.s32 1, %s4724_s15 }
  0x25   : > { %5937 = sst [smem:[#allocation26_spill]] %s4744_s20  ;;  %s6017_s25 = smov (%p4908_p0, %s48_s25), 0 }
  0x26   : > { %5938 = sst [smem:[#allocation27_spill]] %s4748_s21  ;;  %p117_p3 = scmp.ne.s32.totalorder %s4724_s15, %s4720_s30 }
  0x27   : > { %5939 = sst [smem:[#allocation28_spill]] %s4752_s22  ;;  %p123_p4 = scmp.ne.s32.totalorder %s4720_s30, %s4716_s29 }
  0x28   : > { %5940 = sst [smem:[#allocation29_spill]] %s4756_s23  ;;  %s107_s28 = ssub.s32 %s4748_s21, %s6017_s25 }
  0x29   : > { %s5941_s26 = scalar_select %p4908_p0, 1, 0 }
  0x2a   : > { %5942 = sst [smem:[#allocation30_spill]] %s6017_s25  ;;  %p108_p5 = scmp.eq.s32.totalorder %s107_s28, 0 }
  0x2b   : > { %p119_p6 = por %p117_p3, %p5887_p1  ;;  %p4928_p7 = por %p123_p4, %p5886_p2 }
  0x2c   : > { %p5885_p8 = scmp.lt.s32.totalorder %s4756_s23, 4  ;;  %s4937_s12 = sand.u32 1, %s4756_s23  }
  0x2d   : > { %s5943_s14 = scalar_select %p4928_p7, 1, 0 }
  0x2e   : > { %s4934_s13 = scalar_select %p108_p5, %s4724_s15, %s110_s27  }
  0x2f   : > { %5944 = sst [smem:[#allocation31_spill]] %s5943_s14  ;;  %s4940_s11 = sand.u32 1, %s4724_s15  }
  0x30   : > { %5945 = sst [smem:[#allocation32_spill]] %s4934_s13  ;;  %s5881_s29 = sshll.u32 %s4940_s11, 1 }
  0x31   : > { %s3804_s25 = sshll.u32 %s4748_s21, 5  ;;  %s5946_s2 = sld [smem:[#allocation40_spill]] }
  0x32   : > { %s486_s27 = scalar_lea.vmem [#allocation5], %s5881_s29  ;;  %p4955_p9 = pnand %p5885_p8, %p119_p6 }
  0x33   : > { %s494_s13 = sshll.u32 %s486_s27, 4  ;;  %s5948_s3 = sld [smem:[#allocation41_spill]]  ;;  %s4951_s13 = int_to_ptr.vmem [resolvable:$true] %s494_s13 }
  0x34   : > { %s5947_s15 = scalar_select %p4955_p9, 1, 0 }
  0x35   : > { %s5890_s28 = scalar_lea.sflag [#allocation6], %s4937_s12  ;;  %p4969_p11 = pneg %p4955_p9 }
  0x37   : > { %s4947_s5 = scalar_lea.hbm %s5946_s2, %s3804_s25  ;;  %s4417_s14 = scalar_lea.hbm %s5946_s2, 64 }
  0x38   : > { %s4412_s19 = scalar_lea.hbm %s4947_s5, 32  ;;  %p4418_p3 = scmp.lt.u32.totalorder %s4947_s5, %s5946_s2 }
  0x39   : > { %s4962_s9 = scalar_lea.hbm %s5948_s3, %s3804_s25  ;;  %p4413_p10 = scmp.ne.s32.totalorder %s4947_s5, %s4412_s19 }
  0x3a   : > { %p4419_p4 = scmp.lt.u32.totalorder %s4417_s14, %s4412_s19  ;;  %p4421_p6 = scmp.lt.u32.totalorder %s4412_s19, %s4947_s5 }
  0x3b   : > { %p4415_p12 = pnand %p4969_p11, %p4413_p10 }
  0x3c   : > { %p4420_p5 = por %p4419_p4, %p4418_p3 }
  0x3d   : > { %p4416_p13 = pneg %p4415_p12 }
  0x3e   : > { %p4422_p8 = por %p4421_p6, %p4420_p5 }
  0x40   : > { %p4423_p2 = pnand %p4422_p8, %p4416_p13 }
  0x42   : > { %4426 = shalt.err (!%p4423_p2)
}
  0x43   : > { %s4427_s25 = scalar_lea.vmem %s4951_s13, 32  ;;  %s4758_s20 = smov [#allocation5]  }
  0x44   : > { %p4428_p10 = scmp.ne.s32.totalorder %s4951_s13, %s4427_s25  ;;  %s4432_s27 = sshll.u32 %s4758_s20, 4  ;;  %s4433_s27 = int_to_ptr.vmem [resolvable:$false] %s4432_s27 }
  0x45   : > { %s4434_s1 = scalar_lea.vmem %s4433_s27, 64  ;;  %p4435_p7 = scmp.lt.s32.totalorder %s4951_s13, %s4433_s27 }
  0x46   : > { %p4430_p12 = pnand %p4428_p10, %p4969_p11  ;;  %p4436_p0 = scmp.lt.s32.totalorder %s4434_s1, %s4427_s25 }
  0x48   : > { %p4431_p1 = pneg %p4430_p12  ;;  %p4437_p3 = por %p4436_p0, %p4435_p7 }
  0x4a   : > { %p4438_p4 = pnand %p4437_p3, %p4431_p1 }
  0x4c   : > { %4441 = shalt.err (!%p4438_p4)
}
  0x4d   : > { %3876 = dma.hbm_to_vmem [thread:$0]  (!%p4955_p9), %s4947_s5, 32, %s4951_s13, %s5890_s28  }
  0x4e   : > { %p3526_p2 = scmp.ge.s32.totalorder %s4756_s23, 1  ;;  %p630_p8 = scmp.lt.s32.totalorder %s4756_s23, 5 }
  0x4f   : > { %s3850_s14 = smul.u32 768, %s4940_s11  ;;  %s5952_s4 = sld [smem:[#allocation42_spill]] }
  0x50   : > { %s3851_s19 = smul.u32 12288, %s4748_s21  ;;  %p4998_p0 = pnand %p3526_p2, %p630_p8 }
  0x51   : > { %s524_s1 = scalar_lea.vmem [#allocation8], %s3850_s14  ;;  %s5894_s5 = scalar_lea.sflag [#allocation9], %s4937_s12 }
  0x52   : > { %s5950_s7 = scalar_select %p4998_p0, 1, 0 }
  0x53   : > { %s531_s2 = sshll.u32 %s524_s1, 4  ;;  %s5007_s2 = int_to_ptr.vmem [resolvable:$true] %s531_s2 }
  0x54   : > { %5951 = sst [smem:[#allocation33_spill]] %s5950_s7 }
  0x55   : > { %s5005_s27 = scalar_lea.hbm %s5952_s4, %s3851_s19  ;;  %s4447_s25 = scalar_lea.hbm %s5952_s4, 24576 }
  0x56   : > { %s4442_s13 = scalar_lea.hbm %s5005_s27, 12288  ;;  %p4448_p5 = scmp.lt.u32.totalorder %s5005_s27, %s5952_s4 }
  0x57   : > { %p4443_p1 = scmp.ne.s32.totalorder %s5005_s27, %s4442_s13  ;;  %p4449_p6 = scmp.lt.u32.totalorder %s4447_s25, %s4442_s13 }
  0x58   : > { %p4451_p12 = scmp.lt.u32.totalorder %s4442_s13, %s5005_s27 }
  0x59   : > { %p4445_p7 = pnand %p4443_p1, %p4969_p11  ;;  %p4450_p10 = por %p4449_p6, %p4448_p5 }
  0x5b   : > { %p4446_p13 = pneg %p4445_p7  ;;  %p4452_p3 = por %p4451_p12, %p4450_p10 }
  0x5d   : > { %p4453_p4 = pnand %p4452_p3, %p4446_p13 }
  0x5f   : > { %4456 = shalt.err (!%p4453_p4)
}
  0x60   : > { %s4457_s14 = scalar_lea.vmem %s5007_s2, 12288  ;;  %s4759_s30 = smov [#allocation8]  }
  0x61   : > { %p4458_p2 = scmp.ne.s32.totalorder %s5007_s2, %s4457_s14  ;;  %s4462_s28 = sshll.u32 %s4759_s30, 4  ;;  %s4463_s28 = int_to_ptr.vmem [resolvable:$false] %s4462_s28 }
  0x62   : > { %s4464_s1 = scalar_lea.vmem %s4463_s28, 24576  ;;  %p4465_p7 = scmp.lt.s32.totalorder %s5007_s2, %s4463_s28 }
  0x63   : > { %p4460_p8 = pnand %p4458_p2, %p4969_p11  ;;  %p4466_p0 = scmp.lt.s32.totalorder %s4464_s1, %s4457_s14 }
  0x65   : > { %p4461_p1 = pneg %p4460_p8  ;;  %p4467_p5 = por %p4466_p0, %p4465_p7 }
  0x67   : > { %p4468_p6 = pnand %p4467_p5, %p4461_p1 }
  0x69   : > { %4471 = shalt.err (!%p4468_p6)
}
  0x6a   : > { %s4760_s13 = smov 384   ;;  %s4761_s25 = smov 24  }
  0x6b   : > { %3882 = dma.hbm_to_vmem [thread:$0]  (!%p4955_p9), %s5005_s27, 12288, %s5007_s2, %s5894_s5, %s4760_s13, %s4760_s13, %s4761_s25  }
  0x6c   : > { %s5895_s19 = sshll.u32 %s4940_s11, 9  ;;  %s3807_s20 = sshll.u32 %s4748_s21, 13 }
  0x6d   : > { %s5953_s8 = sld [smem:[#allocation46_spill]]  ;;  %s580_s1 = scalar_lea.vmem [#allocation11], %s5895_s19 }
  0x6e   : > { %s587_s4 = sshll.u32 %s580_s1, 4  ;;  %s5954_s10 = sld [smem:[#allocation48_spill]]  ;;  %s5042_s4 = int_to_ptr.vmem [resolvable:$true] %s587_s4 }
  0x6f   : > { %s5896_s27 = scalar_lea.sflag [#allocation12], %s4937_s12 }
  0x73   : > { %s5038_s28 = scalar_lea.hbm %s5953_s8, %s3807_s20  ;;  %s4477_s30 = scalar_lea.hbm %s5953_s8, 16384 }
  0x74   : > { %s5047_s2 = scalar_lea.hbm %s5954_s10, %s3807_s20  ;;  %s4472_s13 = scalar_lea.hbm %s5038_s28, 8192 }
  0x75   : > { %p4473_p0 = scmp.ne.s32.totalorder %s5038_s28, %s4472_s13  ;;  %p4478_p12 = scmp.lt.u32.totalorder %s5038_s28, %s5953_s8 }
  0x76   : > { %p4479_p3 = scmp.lt.u32.totalorder %s4477_s30, %s4472_s13  ;;  %p4481_p2 = scmp.lt.u32.totalorder %s4472_s13, %s5038_s28 }
  0x77   : > { %p4475_p13 = pnand %p4473_p0, %p4969_p11 }
  0x78   : > { %p4480_p4 = por %p4479_p3, %p4478_p12 }
  0x79   : > { %p4476_p10 = pneg %p4475_p13 }
  0x7a   : > { %p4482_p8 = por %p4481_p2, %p4480_p4 }
  0x7c   : > { %p4483_p1 = pnand %p4482_p8, %p4476_p10 }
  0x7e   : > { %4486 = shalt.err (!%p4483_p1)
}
  0x7f   : > { %s4487_s6 = scalar_lea.vmem %s5042_s4, 8192  ;;  %s4762_s7 = smov [#allocation11]  }
  0x80   : > { %p4488_p7 = scmp.ne.s32.totalorder %s5042_s4, %s4487_s6  ;;  %s4492_s20 = sshll.u32 %s4762_s7, 4  ;;  %s4493_s20 = int_to_ptr.vmem [resolvable:$false] %s4492_s20 }
  0x81   : > { %s4494_s5 = scalar_lea.vmem %s4493_s20, 16384  ;;  %p4495_p0 = scmp.lt.s32.totalorder %s5042_s4, %s4493_s20 }
  0x82   : > { %p4490_p5 = pnand %p4488_p7, %p4969_p11  ;;  %p4496_p13 = scmp.lt.s32.totalorder %s4494_s5, %s4487_s6 }
  0x84   : > { %p4491_p6 = pneg %p4490_p5  ;;  %p4497_p12 = por %p4496_p13, %p4495_p0 }
  0x86   : > { %p4498_p3 = pnand %p4497_p12, %p4491_p6 }
  0x88   : > { %4501 = shalt.err (!%p4498_p3)
}
  0x89   : > { %s5897_s19 = smov 256   ;;  %s5898_s1 = smov 16  }
  0x8a   : > { %3888 = dma.hbm_to_vmem [thread:$0]  (!%p4955_p9), %s5038_s28, 8192, %s5042_s4, %s5896_s27, %s5897_s19, %s5897_s19, %s5898_s1  }
  0x8b   : > { %s5955_s13 = sshll.u32 %s4940_s11, 9  ;;  %s3504_s30 = sadd.s32 4294967294, %s4756_s23  }
  0x8c   : > { %s608_s25 = scalar_lea.vmem [#allocation13], %s5955_s13  ;;  %s51_s6 = sadd.s32 1, %s4752_s22 }
  0x8d   : > { %s615_s14 = sshll.u32 %s608_s25, 4  ;;  %p5956_p10 = scmp.ne.s32.totalorder %s5941_s26, 0  ;;  %s5078_s14 = int_to_ptr.vmem [resolvable:$true] %s615_s14 }
  0x8e   : > { %s58_s7 = sadd.s32 1, %s4736_s18  ;;  %p65_p4 = scmp.ne.s32.totalorder %s4736_s18, %s4732_s17 }
  0x8f   : > { %s6019_s6 = smov (!%p5956_p10, %s51_s6), %s4752_s22  ;;  %p71_p8 = scmp.ne.s32.totalorder %s4732_s17, %s4728_s16 }
  0x90   : > { %p53_p2 = scmp.ge.s32.totalorder %s6019_s6, 2  ;;  %p5957_p1 = scmp.eq.s32.totalorder %s4756_s23, 0 }
  0x91   : > { %p423_p5 = scmp.eq.s32.totalorder %s4905_s24, 3  ;;  %p5960_p6 = scmp.eq.s32.totalorder %s4905_s24, 0 }
  0x92   : > { %p5092_p7 = por %p5957_p1, %p65_p4  ;;  %s6021_s6 = smov (%p53_p2, %s6019_s6), 0 }
  0x93   : > { %5959 = sst [smem:[#allocation34_spill]] %s6021_s6  ;;  %p5101_p0 = por %p5960_p6, %p71_p8 }
  0x94   : > { %p5105_p13 = por %p423_p5, %p65_p4  ;;  %s55_s20 = ssub.s32 %s4752_s22, %s6021_s6 }
  0x95   : > { %s5961_s26 = scalar_select %p5101_p0, 1, 0 }
  0x96   : > { %s5962_s28 = scalar_select %p5105_p13, 1, 0 }
  0x97   : > { %p429_p12 = scmp.eq.s32.totalorder %s3504_s30, 3  ;;  %p56_p3 = scmp.eq.s32.totalorder %s55_s20, 0 }
  0x98   : > { %5963 = sst [smem:[#allocation35_spill]] %s5962_s28  ;;  %s455_s5 = sand.u32 1, %s4736_s18  }
  0x99   : > { %p5112_p10 = por %p429_p12, %p71_p8  ;;  %s3507_s27 = sshll.u32 %s455_s5, 5 }
  0x9a   : > { %s5117_s25 = scalar_select %p56_p3, %s4736_s18, %s58_s7  }
  0x9b   : > { %s5964_s13 = scalar_select %p5112_p10, 1, 0 }
  0x9c   : > { %5966 = sst [smem:[#allocation37_spill]] %s5117_s25  ;;  %s3803_s19 = sshll.u32 %s4752_s22, 9 }
  0x9d   : > { %5965 = sst [smem:[#allocation36_spill]] %s5964_s13  ;;  %s459_s6 = scalar_lea.vmem [#allocation2], %s3507_s27 }
  0x9e   : > { %s5967_s0 = sld [smem:[#allocation38_spill]]  ;;  %s466_s30 = sshll.u32 %s459_s6, 4  ;;  %s5133_s30 = int_to_ptr.vmem [resolvable:$true] %s466_s30 }
  0x9f   : > { %p5968_p4 = scmp.lt.s32.totalorder %s4756_s23, 4  ;;  %s5970_s7 = sshll.u32 %s4940_s11, 1 }
  0xa0   : > { %s505_s8 = scalar_lea.vmem [#allocation7], %s5970_s7  ;;  %s5139_s1 = scalar_lea.sflag [#allocation3], %s455_s5 }
  0xa1   : > { %p5129_p2 = pnand %p5968_p4, %p5092_p7 }
  0xa3   : > { %p4504_p1 = pneg %p5129_p2 }
  0xa4   : > { %s5123_s16 = scalar_lea.hbm %s5967_s0, %s3803_s19  ;;  %s513_s19 = sshll.u32 %s505_s8, 4  ;;  %s5137_s19 = int_to_ptr.vmem [resolvable:$true] %s513_s19 }
  0xa5   : > { %s4502_s27 = scalar_lea.hbm %s5123_s16, 512  ;;  %s4507_s22 = scalar_lea.hbm %s5967_s0, 1024 }
  0xa6   : > { %p4503_p8 = scmp.ne.s32.totalorder %s5123_s16, %s4502_s27  ;;  %p4508_p6 = scmp.lt.u32.totalorder %s5123_s16, %s5967_s0 }
  0xa7   : > { %p4509_p12 = scmp.lt.u32.totalorder %s4507_s22, %s4502_s27  ;;  %p4511_p4 = scmp.lt.u32.totalorder %s4502_s27, %s5123_s16 }
  0xa8   : > { %p4505_p7 = pnand %p4504_p1, %p4503_p8 }
  0xa9   : > { %p4510_p3 = por %p4509_p12, %p4508_p6 }
  0xaa   : > { %p4506_p5 = pneg %p4505_p7 }
  0xab   : > { %p4512_p10 = por %p4511_p4, %p4510_p3 }
  0xad   : > { %p4513_p13 = pnand %p4512_p10, %p4506_p5 }
  0xaf   : > { %4516 = shalt.err (!%p4513_p13)
}
  0xb0   : > { %s4517_s5 = scalar_lea.vmem %s5133_s30, 512  ;;  %s4765_s7 = smov [#allocation2]  }
  0xb1   : > { %p4518_p8 = scmp.ne.s32.totalorder %s5133_s30, %s4517_s5  ;;  %s4522_s8 = sshll.u32 %s4765_s7, 4  ;;  %s4523_s8 = int_to_ptr.vmem [resolvable:$false] %s4522_s8 }
  0xb2   : > { %s4524_s18 = scalar_lea.vmem %s4523_s8, 1024  ;;  %p4525_p9 = scmp.lt.s32.totalorder %s5133_s30, %s4523_s8 }
  0xb3   : > { %p4520_p7 = pnand %p4518_p8, %p4504_p1  ;;  %p4526_p6 = scmp.lt.s32.totalorder %s4524_s18, %s4517_s5 }
  0xb5   : > { %p4521_p0 = pneg %p4520_p7  ;;  %p4527_p12 = por %p4526_p6, %p4525_p9 }
  0xb7   : > { %p4528_p3 = pnand %p4527_p12, %p4521_p0 }
  0xb9   : > { %4531 = shalt.err (!%p4528_p3)
}
  0xba   : > { %s5971_s22 = smov 16   ;;  %s5972_s25 = smov 256  }
  0xbb   : > { %3873 = dma.hbm_to_vmem [thread:$0]  (!%p5129_p2), %s5123_s16, 512, %s5133_s30, %s5139_s1, %s5972_s25, %s5972_s25, %s5971_s22  }
  0xbc   : > { %s4532_s27 = scalar_lea.hbm %s4962_s9, 32  ;;  %s4537_s20 = scalar_lea.hbm %s5948_s3, 64 }
  0xbd   : > { %p4533_p13 = scmp.ne.s32.totalorder %s4962_s9, %s4532_s27  ;;  %p4538_p10 = scmp.lt.u32.totalorder %s4962_s9, %s5948_s3 }
  0xbe   : > { %p4539_p1 = scmp.lt.u32.totalorder %s4537_s20, %s4532_s27  ;;  %p4541_p4 = scmp.lt.u32.totalorder %s4532_s27, %s4962_s9 }
  0xbf   : > { %p4535_p9 = pnand %p4533_p13, %p4969_p11 }
  0xc0   : > { %p4540_p5 = por %p4539_p1, %p4538_p10 }
  0xc1   : > { %p4536_p0 = pneg %p4535_p9 }
  0xc2   : > { %p4542_p8 = por %p4541_p4, %p4540_p5 }
  0xc4   : > { %p4543_p7 = pnand %p4542_p8, %p4536_p0 }
  0xc6   : > { %4546 = shalt.err (!%p4543_p7)
}
  0xc7   : > { %s4547_s16 = scalar_lea.vmem %s5137_s19, 32  ;;  %s4766_s30 = smov [#allocation7]  }
  0xc8   : > { %p4548_p2 = scmp.ne.s32.totalorder %s5137_s19, %s4547_s16  ;;  %s4552_s1 = sshll.u32 %s4766_s30, 4  ;;  %s4553_s1 = int_to_ptr.vmem [resolvable:$false] %s4552_s1 }
  0xc9   : > { %s4554_s8 = scalar_lea.vmem %s4553_s1, 64  ;;  %p4555_p3 = scmp.lt.s32.totalorder %s5137_s19, %s4553_s1 }
  0xca   : > { %p4550_p6 = pnand %p4548_p2, %p4969_p11  ;;  %p4556_p13 = scmp.lt.s32.totalorder %s4554_s8, %s4547_s16 }
  0xcc   : > { %p4551_p12 = pneg %p4550_p6  ;;  %p4557_p9 = por %p4556_p13, %p4555_p3 }
  0xce   : > { %p4558_p10 = pnand %p4557_p9, %p4551_p12 }
  0xd0   : > { %4561 = shalt.err (!%p4558_p10)
}
  0xd1   : > { %p5973_p0 = scmp.ne.s32.totalorder %s5947_s15, 0  ;;  %s5974_s18 = scalar_lea.sflag [#allocation6], %s4937_s12 }
  0xd2   : > { %s3517_s22 = sshll.u32 %s4940_s11, 8  ;;  %s3806_s25 = sshll.u32 %s4748_s21, 12 }
  0xd3   : > { %3879 = dma.hbm_to_vmem [thread:$0]  (!%p5973_p0), %s4962_s9, 32, %s5137_s19, %s5974_s18  }
  0xd4   : > { %s5975_s4 = sld [smem:[#allocation44_spill]]  ;;  %s552_s5 = scalar_lea.vmem [#allocation10], %s3517_s22 }
  0xd5   : > { %s559_s7 = sshll.u32 %s552_s5, 4  ;;  %s5200_s7 = int_to_ptr.vmem [resolvable:$true] %s559_s7 }
  0xda   : > { %s5198_s20 = scalar_lea.hbm %s5975_s4, %s3806_s25  ;;  %s4567_s19 = scalar_lea.hbm %s5975_s4, 8192 }
  0xdb   : > { %s4562_s16 = scalar_lea.hbm %s5198_s20, 4096  ;;  %p4568_p8 = scmp.lt.u32.totalorder %s5198_s20, %s5975_s4 }
  0xdc   : > { %p4563_p1 = scmp.ne.s32.totalorder %s5198_s20, %s4562_s16  ;;  %p4569_p7 = scmp.lt.u32.totalorder %s4567_s19, %s4562_s16 }
  0xdd   : > { %p4571_p6 = scmp.lt.u32.totalorder %s4562_s16, %s5198_s20 }
  0xde   : > { %p4565_p5 = pnand %p4563_p1, %p4969_p11  ;;  %p4570_p2 = por %p4569_p7, %p4568_p8 }
  0xe0   : > { %p4566_p4 = pneg %p4565_p5  ;;  %p4572_p12 = por %p4571_p6, %p4570_p2 }
  0xe2   : > { %p4573_p3 = pnand %p4572_p12, %p4566_p4 }
  0xe4   : > { %4576 = shalt.err (!%p4573_p3)
}
  0xe5   : > { %s4577_s8 = scalar_lea.vmem %s5200_s7, 4096  ;;  %s4767_s18 = smov [#allocation10]  }
  0xe6   : > { %p4578_p13 = scmp.ne.s32.totalorder %s5200_s7, %s4577_s8  ;;  %s4582_s22 = sshll.u32 %s4767_s18, 4  ;;  %s4583_s22 = int_to_ptr.vmem [resolvable:$false] %s4582_s22 }
  0xe7   : > { %s4584_s25 = scalar_lea.vmem %s4583_s22, 8192  ;;  %p4585_p1 = scmp.lt.s32.totalorder %s5200_s7, %s4583_s22 }
  0xe8   : > { %p4580_p9 = pnand %p4578_p13, %p4969_p11  ;;  %p4586_p5 = scmp.lt.s32.totalorder %s4584_s25, %s4577_s8 }
  0xea   : > { %p4581_p10 = pneg %p4580_p9  ;;  %p4587_p8 = por %p4586_p5, %p4585_p1 }
  0xec   : > { %p4588_p7 = pnand %p4587_p8, %p4581_p10 }
  0xee   : > { %4591 = shalt.err (!%p4588_p7)
}
  0xef   : > { %s4768_s27 = smov 128   ;;  %s4769_s6 = smov 8  }
  0xf0   : > { %s5976_s5 = scalar_lea.sflag [#allocation9], %s4937_s12  ;;  %s4592_s16 = scalar_lea.hbm %s5047_s2, 8192 }
  0xf1   : > { %3885 = dma.hbm_to_vmem [thread:$0]  (!%p5973_p0), %s5198_s20, 4096, %s5200_s7, %s5976_s5, %s4768_s27, %s4768_s27, %s4769_s6  }
  0xf2   : > { %p4593_p4 = scmp.ne.s32.totalorder %s5047_s2, %s4592_s16  ;;  %s4597_s19 = scalar_lea.hbm %s5954_s10, 16384 }
  0xf3   : > { %p4598_p12 = scmp.lt.u32.totalorder %s5047_s2, %s5954_s10  ;;  %p4599_p3 = scmp.lt.u32.totalorder %s4597_s19, %s4592_s16 }
  0xf4   : > { %p4595_p2 = pnand %p4593_p4, %p4969_p11  ;;  %p4601_p9 = scmp.lt.u32.totalorder %s4592_s16, %s5047_s2 }
  0xf5   : > { %p4600_p13 = por %p4599_p3, %p4598_p12 }
  0xf6   : > { %p4596_p6 = pneg %p4595_p2 }
  0xf7   : > { %p4602_p10 = por %p4601_p9, %p4600_p13 }
  0xf9   : > { %p4603_p1 = pnand %p4602_p10, %p4596_p6 }
  0xfb   : > { %4606 = shalt.err (!%p4603_p1)
}
  0xfc   : > { %s4607_s20 = scalar_lea.vmem %s5078_s14, 8192  ;;  %s4770_s7 = smov [#allocation13]  }
  0xfd   : > { %p4608_p5 = scmp.ne.s32.totalorder %s5078_s14, %s4607_s20  ;;  %s4612_s8 = sshll.u32 %s4770_s7, 4  ;;  %s4613_s8 = int_to_ptr.vmem [resolvable:$false] %s4612_s8 }
  0xfe   : > { %s4614_s18 = scalar_lea.vmem %s4613_s8, 16384  ;;  %p4615_p4 = scmp.lt.s32.totalorder %s5078_s14, %s4613_s8 }
  0xff   : > { %p4610_p8 = pnand %p4608_p5, %p4969_p11  ;;  %p4616_p2 = scmp.lt.s32.totalorder %s4614_s18, %s4607_s20 }
 0x101   : > { %p4611_p7 = pneg %p4610_p8  ;;  %p4617_p12 = por %p4616_p2, %p4615_p4 }
 0x103   : > { %p4618_p3 = pnand %p4617_p12, %p4611_p7 }
 0x105   : > { %4621 = shalt.err (!%p4618_p3)
}
 0x106   : > { %s5977_s22 = scalar_lea.sflag [#allocation12], %s4937_s12  ;;  %s5978_s29 = sld [smem:[#allocation33_spill]] }
 0x107   : > { %3891 = dma.hbm_to_vmem [thread:$0]  (!%p5973_p0), %s5047_s2, 8192, %s5078_s14, %s5977_s22, %s4768_s27, %s4768_s27, %s4769_s6  }
 0x10c   : > { %p5979_p11 = scmp.ne.s32.totalorder %s5978_s29, 0 }
 0x10d   : > { %s5257_s25 = sand.u32 (!%p5979_p11), 1, %s4732_s17   ;;  %p5980_p6 = scmp.ne.s32.totalorder (!%p5979_p11), %s5961_s26, 0 }
 0x10e   : > { %634 = sbr.rel (%p5979_p11) target bundleno = 2912 (0xb60), region = 76  ;;  %s5907_s5 = sshll.u32 (!%p5979_p11), %s5257_s25, 5 }
 0x10f   : > { %s637_s15 = scalar_lea.sflag (!%p5979_p11), [#allocation3], %s5257_s25  ;;  %s5263_s16 = scalar_lea.vmem (!%p5979_p11), [#allocation2], %s5907_s5 }
 0x115   : > { %4695 = dma.done.wait (%p5980_p6), %s637_s15, 512  }
 0x116   : > { %4697 = vsyncadd (%p5980_p6), %s637_s15, 4294966784  ;;  %s5981_s12 = sld [smem:[#allocation20_spill]]  ;;  %s5982_s2 = sld [smem:[#allocation31_spill]] }
 0x117   : > { %s645_s14 = sand.u32 1, %s4905_s24  }
 0x118   : > { %s646_s11 = scalar_lea.sflag [#allocation6], %s645_s14 }
 0x11c   : > { %s5271_s27 = sand.u32 1, %s5981_s12   ;;  %p5983_p0 = scmp.ne.s32.totalorder %s5982_s2, 0 }
 0x11d   : > { %s3528_s6 = sshll.u32 %s5271_s27, 1 }
 0x11e   : > { %s5274_s9 = scalar_lea.vmem [#allocation5], %s3528_s6 }
 0x11f   : > { %4699 = dma.done.wait (%p5983_p0), %s646_s11, 64  }
 0x120   : > { %4701 = vsyncadd (%p5983_p0), %s646_s11, 4294967232  ;;  %s3852_s26 = smul.u32 768, %s5271_s27  ;;  %s5281_s19 = scalar_lea.vmem [#allocation7], %s3528_s6 }
 0x121   : > { %s664_s30 = scalar_lea.sflag [#allocation9], %s645_s14 }
 0x122   : > { %s5283_s1 = scalar_lea.vmem [#allocation8], %s3852_s26 }
 0x123   : > { %4703 = dma.done.wait (%p5983_p0), %s664_s30, 16384  }
 0x124   : > { %4705 = vsyncadd (%p5983_p0), %s664_s30, 4294950912  ;;  %s3530_s24 = sshll.u32 %s5271_s27, 8  ;;  %s3531_s20 = sshll.u32 %s5271_s27, 9 }
 0x125   : > { %s5291_s7 = scalar_lea.vmem [#allocation10], %s3530_s24  ;;  %s682_s8 = scalar_lea.sflag [#allocation12], %s645_s14 }
 0x126   : > { %s5293_s18 = scalar_lea.vmem [#allocation11], %s3531_s20 }
 0x127   : > { %4707 = dma.done.wait (%p5983_p0), %s682_s8, 16384  }
 0x128   : > { %4709 = vsyncadd (%p5983_p0), %s682_s8, 4294950912  ;;  %s5984_s22 = sld [smem:[#allocation26_spill]]  ;;  %s5985_s29 = sld [smem:[#allocation25_spill]] }
 0x129   : > { %s5987_s24 = sld [smem:[#allocation45_spill]]  ;;  %s5988_s4 = sld [smem:[#allocation43_spill]] }
 0x12a   : > { %s5989_s13 = sld [smem:[#allocation47_spill]]  ;;  %s5990_s27 = sld [smem:[#allocation49_spill]] }
 0x12b   : > { %s5329_s28 = scalar_lea.vmem [#allocation13], %s3531_s20  ;;  %s5991_s30 = sshll.u32 %s5257_s25, 5 }
 0x12c   : > { %s5333_s2 = scalar_lea.vmem [#allocation14], %s5991_s30 }
 0x12e   : > { %p788_p13 = scmp.lt.s32.totalorder %s5984_s22, 1  ;;  %p791_p9 = scmp.lt.s32.totalorder %s5985_s29, 1 }
 0x12f   : > { %p3537_p10 = scmp.ne.s32.totalorder %s5985_s29, 0 }
 0x130   : > { %s6023_s22 = smov (!%p788_p13, %s5984_s22), 1  ;;  %v812_v0 = vld [vmem:[%s5263_s16] sm:$0xff] (!%p3537_p10)  ;;  %v813_v1 = vld [vmem:[%s5263_s16 + $0x8] sm:$0xff] (!%p3537_p10)  ;;  %v814_v2 = vld [vmem:[%s5263_s16 + $0x10] sm:$0xff] (!%p3537_p10) }
 0x131   : > { %s792_s15 = scalar_select %p791_p9, %s5985_s29, 1 }
 0x132   : > { %811 = sbr.rel (%p3537_p10) target bundleno = 313 (0x139), region = 108  ;;  %816 = vst [vmem:[%s5333_s2] sm:$0xff] (!%p3537_p10), %v812_v0  ;;  %817 = vst [vmem:[%s5333_s2 + $0x8] sm:$0xff] (!%p3537_p10), %v813_v1  ;;  %v815_v3 = vld [vmem:[%s5263_s16 + $0x18] sm:$0xff] (!%p3537_p10) }
 0x133   : > { %s3853_s11 = smul.u32 6, %s792_s15  ;;  %s3534_s26 = sshll.u32 %s792_s15, 1  ;;  %818 = vst [vmem:[%s5333_s2 + $0x10] sm:$0xff] (!%p3537_p10), %v814_v2  ;;  %819 = vst [vmem:[%s5333_s2 + $0x18] sm:$0xff] (!%p3537_p10), %v815_v3 }
 0x134   : > { %s5312_s8 = scalar_lea.vmem %s5987_s24, %s3534_s26  ;;  %s3535_s5 = sshll.u32 %s792_s15, 2 }
 0x135   : > { %s5317_s10 = scalar_lea.vmem %s5988_s4, %s3853_s11  ;;  %s5322_s23 = scalar_lea.vmem %s5989_s13, %s3535_s5 }
 0x136   : > { %s5327_s6 = scalar_lea.vmem %s5990_s27, %s3534_s26 }
 0x139 PF: > { %v5345_v4 = vld [vmem:[%s5333_s2] sm:$0xff]  ;;  %v5348_v5 = vld [vmem:[%s5333_s2 + $0x8] sm:$0xff]  ;;  %vm4772_vm0 = vmmov 0   ;;  %vm1679_vm1 = vcmask 130048   ;;  %s5994_s21 = sld [smem:[#allocation25_spill]] }
 0x13a   : > { %v5351_v6 = vld [vmem:[%s5333_s2 + $0x10] sm:$0xff]  ;;  %v827_v7 = vadd.f32 %v5348_v5, %v5345_v4  ;;  %v5356_v8 = vld [vmem:[%s5333_s2 + $0x18] sm:$0xff] }
 0x13b   : > { %v830_v9 = vadd.f32 %v5356_v8, %v5351_v6  ;;  %v3996_v10 = vld [vmem:[%s5283_s1 + $0x4] ss:$24 sps:$4 sm:$0xff]   ;;  %v3998_v11 = vld [vmem:[%s5283_s1] ss:$24 sps:$4 sm:$0xff]   ;;  %v3999_v12 = vld [vmem:[%s5283_s1 + $0x14] ss:$24 sps:$4 sm:$0xff]  }
 0x13c   : > { %828 = vadd.xlane.f32.xlu0 %v827_v7  ;;  %v4001_v13 = vld [vmem:[%s5283_s1 + $0x10] ss:$24 sps:$4 sm:$0xff]   ;;  %v4002_v14 = vld [vmem:[%s5283_s1 + $0x34] ss:$24 sps:$4 sm:$0xff]   ;;  %1500 = vmatprep.subr.bf16.mxu1 %v3996_v10  ;;  %v4005_v15 = vld [vmem:[%s5283_s1 + $0x44] ss:$24 sps:$4 sm:$0xff]  }
 0x13d   : > { %1586 = vmatprep.subr.bf16.mxu0 %v3999_v12  ;;  %1501 = vmatpush1.bf16.msra.mxu1 %v3998_v11  ;;  %v4004_v16 = vld [vmem:[%s5283_s1 + $0x30] ss:$24 sps:$4 sm:$0xff]   ;;  %v4007_v17 = vld [vmem:[%s5283_s1 + $0x40] ss:$24 sps:$4 sm:$0xff]   ;;  %v4008_v18 = vld [vmem:[%s5283_s1 + $0x64] ss:$24 sps:$4 sm:$0xff]  }
 0x13e   : > { %1587 = vmatpush1.bf16.msra.mxu0 %v4001_v13  ;;  %1502 = vmatprep.subr.bf16.mxu1 %v4002_v14  ;;  %v4011_v19 = vld [vmem:[%s5283_s1 + $0x74] ss:$24 sps:$4 sm:$0xff]   ;;  %v4010_v20 = vld [vmem:[%s5283_s1 + $0x60] ss:$24 sps:$4 sm:$0xff]   ;;  %v4013_v21 = vld [vmem:[%s5283_s1 + $0x70] ss:$24 sps:$4 sm:$0xff]  }
 0x13f   : > { %1588 = vmatprep.subr.bf16.mxu0 %v4005_v15  ;;  %v4014_v22 = vld [vmem:[%s5283_s1 + $0x94] ss:$24 sps:$4 sm:$0xff]   ;;  %v4017_v23 = vld [vmem:[%s5283_s1 + $0xa4] ss:$24 sps:$4 sm:$0xff]   ;;  %v4016_v24 = vld [vmem:[%s5283_s1 + $0x90] ss:$24 sps:$4 sm:$0xff]  }
 0x140   : > { %831 = vadd.xlane.f32.xlu0 %v830_v9  ;;  %v4019_v25 = vld [vmem:[%s5283_s1 + $0xa0] ss:$24 sps:$4 sm:$0xff]   ;;  %v4020_v26 = vld [vmem:[%s5283_s1 + $0xc4] ss:$24 sps:$4 sm:$0xff]   ;;  %v4023_v27 = vld [vmem:[%s5283_s1 + $0xd4] ss:$24 sps:$4 sm:$0xff]  }
 0x141   : > { %1503 = vmatpush1.bf16.msra.mxu1 %v4004_v16  ;;  %v4022_v28 = vld [vmem:[%s5283_s1 + $0xc0] ss:$24 sps:$4 sm:$0xff]   ;;  %v4025_v29 = vld [vmem:[%s5283_s1 + $0xd0] ss:$24 sps:$4 sm:$0xff]   ;;  %v4026_v30 = vld [vmem:[%s5283_s1 + $0xf4] ss:$24 sps:$4 sm:$0xff]  }
 0x142   : > { %1589 = vmatpush1.bf16.msra.mxu0 %v4007_v17  ;;  %1504 = vmatprep.subr.bf16.mxu1 %v4008_v18  ;;  %v4029_v31 = vld [vmem:[%s5283_s1 + $0x104] ss:$24 sps:$4 sm:$0xff]   ;;  %v4028_v32 = vld [vmem:[%s5283_s1 + $0xf0] ss:$24 sps:$4 sm:$0xff]   ;;  %v4031_v33 = vld [vmem:[%s5283_s1 + $0x100] ss:$24 sps:$4 sm:$0xff]  }
 0x143   : > { %1590 = vmatprep.subr.bf16.mxu0 %v4011_v19  ;;  %v4032_v34 = vld [vmem:[%s5283_s1 + $0x124] ss:$24 sps:$4 sm:$0xff]   ;;  %v4035_v35 = vld [vmem:[%s5283_s1 + $0x134] ss:$24 sps:$4 sm:$0xff]   ;;  %v4034_v36 = vld [vmem:[%s5283_s1 + $0x120] ss:$24 sps:$4 sm:$0xff]  }
 0x144   : > { %v4037_v37 = vld [vmem:[%s5283_s1 + $0x130] ss:$24 sps:$4 sm:$0xff]   ;;  %v4038_v38 = vld [vmem:[%s5283_s1 + $0x154] ss:$24 sps:$4 sm:$0xff]   ;;  %v4041_v39 = vld [vmem:[%s5283_s1 + $0x164] ss:$24 sps:$4 sm:$0xff]  }
 0x145   : > { %1505 = vmatpush1.bf16.msra.mxu1 %v4010_v20  ;;  %v4040_v40 = vld [vmem:[%s5283_s1 + $0x150] ss:$24 sps:$4 sm:$0xff]   ;;  %v4043_v41 = vld [vmem:[%s5283_s1 + $0x160] ss:$24 sps:$4 sm:$0xff]   ;;  %v4044_v42 = vld [vmem:[%s5283_s1 + $0x184] ss:$24 sps:$4 sm:$0xff]  }
 0x146   : > { %1591 = vmatpush1.bf16.msra.mxu0 %v4013_v21  ;;  %1506 = vmatprep.subr.bf16.mxu1 %v4014_v22  ;;  %v4047_v43 = vld [vmem:[%s5283_s1 + $0x194] ss:$24 sps:$4 sm:$0xff]   ;;  %v4046_v44 = vld [vmem:[%s5283_s1 + $0x180] ss:$24 sps:$4 sm:$0xff]   ;;  %v4049_v45 = vld [vmem:[%s5283_s1 + $0x190] ss:$24 sps:$4 sm:$0xff]  }
 0x147   : > { %1592 = vmatprep.subr.bf16.mxu0 %v4017_v23  ;;  %v4050_v46 = vld [vmem:[%s5283_s1 + $0x1b4] ss:$24 sps:$4 sm:$0xff]   ;;  %v4052_v61 = vld [vmem:[%s5283_s1 + $0x1b0] ss:$24 sps:$4 sm:$0xff]   ;;  %v4053_v62 = vld [vmem:[%s5283_s1 + $0x1c4] ss:$24 sps:$4 sm:$0xff]  }
 0x148   : > { %v4055_v63 = vld [vmem:[%s5283_s1 + $0x1c0] ss:$24 sps:$4 sm:$0xff]   ;;  %v4056_v0 = vld [vmem:[%s5283_s1 + $0x1e4] ss:$24 sps:$4 sm:$0xff]   ;;  %v4059_v2 = vld [vmem:[%s5283_s1 + $0x1f4] ss:$24 sps:$4 sm:$0xff]  }
 0x149   : > { %1507 = vmatpush1.bf16.msra.mxu1 %v4016_v24  ;;  %v4058_v1 = vld [vmem:[%s5283_s1 + $0x1e0] ss:$24 sps:$4 sm:$0xff]   ;;  %v4061_v3 = vld [vmem:[%s5283_s1 + $0x1f0] ss:$24 sps:$4 sm:$0xff]   ;;  %v4071_v10 = vld [vmem:[%s5283_s1 + $0x254] ss:$24 sps:$4 sm:$0xff]  }
 0x14a   : > { %1593 = vmatpush1.bf16.msra.mxu0 %v4019_v25  ;;  %1508 = vmatprep.subr.bf16.mxu1 %v4020_v26  ;;  %v4067_v7 = vld [vmem:[%s5283_s1 + $0x220] ss:$24 sps:$4 sm:$0xff]   ;;  %v4073_v11 = vld [vmem:[%s5283_s1 + $0x250] ss:$24 sps:$4 sm:$0xff]   ;;  %v4074_v12 = vld [vmem:[%s5283_s1 + $0x274] ss:$24 sps:$4 sm:$0xff]  }
 0x14b   : > { %1594 = vmatprep.subr.bf16.mxu0 %v4023_v27  ;;  %v4070_v9 = vld [vmem:[%s5283_s1 + $0x240] ss:$24 sps:$4 sm:$0xff]   ;;  %v4077_v13 = vld [vmem:[%s5283_s1 + $0x284] ss:$24 sps:$4 sm:$0xff]   ;;  %v4076_v14 = vld [vmem:[%s5283_s1 + $0x270] ss:$24 sps:$4 sm:$0xff]  }
 0x14c   : > { %v4079_v15 = vld [vmem:[%s5283_s1 + $0x280] ss:$24 sps:$4 sm:$0xff]   ;;  %v4080_v16 = vld [vmem:[%s5283_s1 + $0x2a4] ss:$24 sps:$4 sm:$0xff]   ;;  %v4083_v17 = vld [vmem:[%s5283_s1 + $0x2b4] ss:$24 sps:$4 sm:$0xff]  }
 0x14d   : > { %1509 = vmatpush1.bf16.msra.mxu1 %v4022_v28  ;;  %v4082_v18 = vld [vmem:[%s5283_s1 + $0x2a0] ss:$24 sps:$4 sm:$0xff]   ;;  %v4085_v19 = vld [vmem:[%s5283_s1 + $0x2b0] ss:$24 sps:$4 sm:$0xff]   ;;  %v4086_v20 = vld [vmem:[%s5283_s1 + $0x2d4] ss:$24 sps:$4 sm:$0xff]  }
 0x14e   : > { %1595 = vmatpush1.bf16.msra.mxu0 %v4025_v29  ;;  %1510 = vmatprep.subr.bf16.mxu1 %v4026_v30  ;;  %v4089_v21 = vld [vmem:[%s5283_s1 + $0x2e4] ss:$24 sps:$4 sm:$0xff]   ;;  %v4088_v22 = vld [vmem:[%s5283_s1 + $0x2d0] ss:$24 sps:$4 sm:$0xff]   ;;  %v4091_v23 = vld [vmem:[%s5283_s1 + $0x2e0] ss:$24 sps:$4 sm:$0xff]   ;;  %v861_v29 = vlaneseq }
 0x14f   : > { %1596 = vmatprep.subr.bf16.mxu0 %v4029_v31  ;;  %v4094_v24 = vld [vmem:[%s5283_s1 + $0xc] ss:$24 sps:$4 sm:$0xff]   ;;  %p3797_p1 = scmp.ne.s32.totalorder %s5994_s21, 1 }
 0x150   : > { %s5995_s13 = sld [smem:[#allocation50_spill]] (!%p3797_p1)  ;;  %s5996_s16 = sld [smem:[#allocation51_spill]] (!%p3797_p1) }
 0x151   : > { %1511 = vmatpush1.bf16.msra.mxu1 %v4028_v32  ;;  %v5445_v32 = vshrl.u32 %v861_v29, 7 }
 0x152   : > { %1597 = vmatpush1.bf16.msra.mxu0 %v4031_v33  ;;  %1512 = vmatprep.subr.bf16.mxu1 %v4032_v34 }
 0x153   : > { %1598 = vmatprep.subr.bf16.mxu0 %v4035_v35  ;;  %v5448_v33 = vsub.s32 1, %v5445_v32  ;;  %v5451_v34 = vsub.s32 0, %v5445_v32  ;;  %v825_v35 = vld [vmem:[%s5274_s9] sm:$0x3] }
 0x155   : > { %1513 = vmatpush1.bf16.msra.mxu1 %v4034_v36 }
 0x156   : > { %1599 = vmatpush1.bf16.msra.mxu0 %v4037_v37  ;;  %1514 = vmatprep.subr.bf16.mxu1 %v4038_v38  ;;  %v826_v37 = vld [vmem:[%s5281_s19] sm:$0x3] }
 0x157   : > { %1600 = vmatprep.subr.bf16.mxu0 %v4041_v39  ;;  %v5457_v39 = vrot.slane %v825_v35, %v5448_v33 }
 0x159   : > { %1515 = vmatpush1.bf16.msra.mxu1 %v4040_v40 }
 0x15a   : > { %1601 = vmatpush1.bf16.msra.mxu0 %v4043_v41  ;;  %1516 = vmatprep.subr.bf16.mxu1 %v4044_v42  ;;  %v5461_v41 = vrot.slane %v825_v35, %v5451_v34 }
 0x15b   : > { %1602 = vmatprep.subr.bf16.mxu0 %v4047_v43  ;;  %v5464_v43 = vrot.slane %v826_v37, %v5448_v33 }
 0x15d   : > { %1517 = vmatpush1.bf16.msra.mxu1 %v4046_v44  ;;  %v5467_v44 = vrot.slane %v826_v37, %v5451_v34 }
 0x15e   : > { %1603 = vmatpush1.bf16.msra.mxu0 %v4049_v45  ;;  %1518 = vmatprep.subr.bf16.mxu1 %v4050_v46 }
 0x15f   : > { %1604 = vmatprep.subr.bf16.mxu0 %v4053_v62  ;;  %v4103_v62 = vld [vmem:[%s5283_s1 + $0x9c] ss:$24 sps:$4 sm:$0xff]  }
 0x161   : > { %1519 = vmatpush1.bf16.msra.mxu1 %v4052_v61  ;;  %v4098_v61 = vld [vmem:[%s5283_s1 + $0x68] ss:$24 sps:$4 sm:$0xff]  }
 0x162   : > { %1605 = vmatpush1.bf16.msra.mxu0 %v4055_v63  ;;  %1520 = vmatprep.subr.bf16.mxu1 %v4056_v0  ;;  %v4101_v63 = vld [vmem:[%s5283_s1 + $0x98] ss:$24 sps:$4 sm:$0xff]   ;;  %v4106_v0 = vld [vmem:[%s5283_s1 + $0xcc] ss:$24 sps:$4 sm:$0xff]  }
 0x163   : > { %1606 = vmatprep.subr.bf16.mxu0 %v4059_v2  ;;  %v4109_v2 = vld [vmem:[%s5283_s1 + $0xfc] ss:$24 sps:$4 sm:$0xff]  }
 0x165   : > { %1521 = vmatpush1.bf16.msra.mxu1 %v4058_v1  ;;  %v4104_v1 = vld [vmem:[%s5283_s1 + $0xc8] ss:$24 sps:$4 sm:$0xff]  }
 0x166   : > { %1607 = vmatpush1.bf16.msra.mxu0 %v4061_v3  ;;  %v4107_v3 = vld [vmem:[%s5283_s1 + $0xf8] ss:$24 sps:$4 sm:$0xff]  }
 0x1c9   : > { %v829_v47 = vpop.xlane.xlu0 %828 }
 0x1ca   : > { %v834_v48 = vmul.f32 0.00390625, %v829_v47 }
 0x1cc   : > { %v5398_v49 = vsub.f32 %v5345_v4, %v834_v48  ;;  %v5401_v50 = vsub.f32 %v5348_v5, %v834_v48  ;;  %v4062_v4 = vld [vmem:[%s5283_s1 + $0x214] ss:$24 sps:$4 sm:$0xff]   ;;  %v4064_v5 = vld [vmem:[%s5283_s1 + $0x210] ss:$24 sps:$4 sm:$0xff]  }
 0x1cd   : > { %v832_v51 = vpop.xlane.xlu0 %831  ;;  %1522 = vmatprep.subr.bf16.mxu1 %v4062_v4  ;;  %v4112_v4 = vld [vmem:[%s5283_s1 + $0x12c] ss:$24 sps:$4 sm:$0xff]  }
 0x1ce   : > { %v835_v52 = vmul.f32 0.00390625, %v832_v51  ;;  %v840_v53 = vmul.f32 %v5398_v49, %v5398_v49  ;;  %v841_v54 = vmul.f32 %v5401_v50, %v5401_v50  ;;  %1523 = vmatpush1.bf16.msra.mxu1 %v4064_v5  ;;  %v4110_v5 = vld [vmem:[%s5283_s1 + $0x128] ss:$24 sps:$4 sm:$0xff]  }
 0x1d0   : > { %v5408_v55 = vsub.f32 %v5351_v6, %v835_v52  ;;  %v5411_v56 = vsub.f32 %v5356_v8, %v835_v52  ;;  %v844_v57 = vadd.f32 %v841_v54, %v840_v53  ;;  %v4065_v6 = vld [vmem:[%s5283_s1 + $0x224] ss:$24 sps:$4 sm:$0xff]  }
 0x1d1   : > { %1608 = vmatprep.subr.bf16.mxu0 %v4065_v6  ;;  %v4068_v8 = vld [vmem:[%s5283_s1 + $0x244] ss:$24 sps:$4 sm:$0xff]  }
 0x1d2   : > { %845 = vadd.xlane.f32.xlu1 %v844_v57  ;;  %v842_v58 = vmul.f32 %v5408_v55, %v5408_v55  ;;  %v843_v59 = vmul.f32 %v5411_v56, %v5411_v56  ;;  %1609 = vmatpush1.bf16.msra.mxu0 %v4067_v7  ;;  %v4115_v6 = vld [vmem:[%s5283_s1 + $0x15c] ss:$24 sps:$4 sm:$0xff]   ;;  %v4113_v7 = vld [vmem:[%s5283_s1 + $0x158] ss:$24 sps:$4 sm:$0xff]  }
 0x1d3   : > { %1524 = vmatprep.subr.bf16.mxu1 %v4068_v8  ;;  %1610 = vmatprep.subr.bf16.mxu0 %v4071_v10  ;;  %v4118_v8 = vld [vmem:[%s5283_s1 + $0x18c] ss:$24 sps:$4 sm:$0xff]   ;;  %v4121_v10 = vld [vmem:[%s5283_s1 + $0x1bc] ss:$24 sps:$4 sm:$0xff]  }
 0x1d4   : > { %v847_v60 = vadd.f32 %v843_v59, %v842_v58  ;;  %1525 = vmatpush1.bf16.msra.mxu1 %v4070_v9  ;;  %v4097_v58 = vld [vmem:[%s5283_s1 + $0x3c] ss:$24 sps:$4 sm:$0xff]   ;;  %v4095_v59 = vld [vmem:[%s5283_s1 + $0x38] ss:$24 sps:$4 sm:$0xff]   ;;  %v4116_v9 = vld [vmem:[%s5283_s1 + $0x188] ss:$24 sps:$4 sm:$0xff]  }
 0x1d5   : > { %1526 = vmatprep.subr.bf16.mxu1 %v4074_v12  ;;  %v4124_v12 = vld [vmem:[%s5283_s1 + $0x1ec] ss:$24 sps:$4 sm:$0xff]  }
 0x1d6   : > { %848 = vadd.xlane.f32.xlu1 %v847_v60  ;;  %1611 = vmatpush1.bf16.msra.mxu0 %v4073_v11  ;;  %v4100_v60 = vld [vmem:[%s5283_s1 + $0x6c] ss:$24 sps:$4 sm:$0xff]   ;;  %v4119_v11 = vld [vmem:[%s5283_s1 + $0x1b8] ss:$24 sps:$4 sm:$0xff]  }
 0x1d7   : > { %1612 = vmatprep.subr.bf16.mxu0 %v4077_v13  ;;  %v4122_v13 = vld [vmem:[%s5283_s1 + $0x1e8] ss:$24 sps:$4 sm:$0xff]  }
 0x1d8   : > { %1527 = vmatpush1.bf16.msra.mxu1 %v4076_v14  ;;  %v4127_v14 = vld [vmem:[%s5283_s1 + $0x21c] ss:$24 sps:$4 sm:$0xff]  }
 0x1d9   : > { %1528 = vmatprep.subr.bf16.mxu1 %v4080_v16  ;;  %v4130_v16 = vld [vmem:[%s5283_s1 + $0x24c] ss:$24 sps:$4 sm:$0xff]  }
 0x1da   : > { %1613 = vmatpush1.bf16.msra.mxu0 %v4079_v15  ;;  %v4125_v15 = vld [vmem:[%s5283_s1 + $0x218] ss:$24 sps:$4 sm:$0xff]  }
 0x1db   : > { %1614 = vmatprep.subr.bf16.mxu0 %v4083_v17  ;;  %v4128_v17 = vld [vmem:[%s5283_s1 + $0x248] ss:$24 sps:$4 sm:$0xff]  }
 0x1dc   : > { %1529 = vmatpush1.bf16.msra.mxu1 %v4082_v18  ;;  %v4133_v18 = vld [vmem:[%s5283_s1 + $0x27c] ss:$24 sps:$4 sm:$0xff]  }
 0x1dd   : > { %1530 = vmatprep.subr.bf16.mxu1 %v4086_v20  ;;  %v4136_v20 = vld [vmem:[%s5283_s1 + $0x2ac] ss:$24 sps:$4 sm:$0xff]  }
 0x1de   : > { %1615 = vmatpush1.bf16.msra.mxu0 %v4085_v19  ;;  %v4131_v19 = vld [vmem:[%s5283_s1 + $0x278] ss:$24 sps:$4 sm:$0xff]  }
 0x1df   : > { %1616 = vmatprep.subr.bf16.mxu0 %v4089_v21  ;;  %v4134_v21 = vld [vmem:[%s5283_s1 + $0x2a8] ss:$24 sps:$4 sm:$0xff]  }
 0x1e0   : > { %1531 = vmatpush1.bf16.msra.mxu1 %v4088_v22  ;;  %v4139_v22 = vld [vmem:[%s5283_s1 + $0x2dc] ss:$24 sps:$4 sm:$0xff]  }
 0x1e1   : > { %1543 = vmatprep.subr.bf16.mxu1 %v4094_v24  ;;  %v4771_v24 = vmov 0.0  }
 0x1e2   : > { %1617 = vmatpush1.bf16.msra.mxu0 %v4091_v23  ;;  %v4137_v23 = vld [vmem:[%s5283_s1 + $0x2d8] ss:$24 sps:$4 sm:$0xff]  }
 0x1e3   : > { %3818 = vmatprep.subr.bf16.mxu0 %v4771_v24 }
 0x25f   : > { %v846_v25 = vpop.xlane.xlu1 %845 }
 0x260   : > { %v850_v26 = vmul.f32 0.00390625, %v846_v25  ;;  %v1008_v25 = vsub.s32 4, %v5445_v32 }
 0x262   : > { %v852_v27 = vadd.f32 1e-06, %v850_v26  ;;  %v988_v26 = vld [vmem:[%s5317_s10] sm:$0x3f]  ;;  %s5992_s10 = sld [smem:[#allocation39_spill]] }
 0x263   : > { %v849_v28 = vpop.xlane.xlu1 %848  ;;  %v1009_v29 = vrot.slane %v988_v26, %v1008_v25  ;;  %v997_v35 = vrot.slane %v988_v26, %v5448_v33 }
 0x264   : > { %4380 = vrsqrt.f32 %v852_v27  ;;  %v851_v30 = vmul.f32 0.00390625, %v849_v28  ;;  %v1012_v27 = vsub.s32 5, %v5445_v32  ;;  %v993_v28 = vrot.slane %v988_v26, %v5451_v34 }
 0x266   : > { %v853_v31 = vadd.f32 1e-06, %v851_v30 }
 0x268   : > { %4382 = vrsqrt.f32 %v853_v31  ;;  %s5993_s17 = scalar_lea.vmem %s5992_s10, %s6023_s22 }
 0x26e   : > { %v4381_v36 = vpop.eup %4380 }
 0x26f   : > { %v857_v38 = vmul.f32 %v4381_v36, %v5401_v50  ;;  %v856_v40 = vmul.f32 %v4381_v36, %v5398_v49  ;;  %v1013_v36 = vrot.slane %v988_v26, %v1012_v27 }
 0x271   : > { %v872_v46 = vmul.f32 %v5457_v39, %v857_v38  ;;  %v871_v48 = vmul.f32 %v5461_v41, %v856_v40 }
 0x272   : > { %v4383_v42 = vpop.eup %4382 }
 0x273   : > { %v859_v45 = vmul.f32 %v4383_v42, %v5411_v56  ;;  %v858_v47 = vmul.f32 %v4383_v42, %v5408_v55  ;;  %v887_v51 = vadd.f32 %v5464_v43, %v872_v46  ;;  %v886_v53 = vadd.f32 %v5467_v44, %v871_v48  ;;  %v4092_v55 = vld [vmem:[%s5283_s1 + $0x8] ss:$24 sps:$4 sm:$0xff]  }
 0x275   : > { %v874_v49 = vmul.f32 %v5457_v39, %v859_v45  ;;  %v873_v50 = vmul.f32 %v5461_v41, %v858_v47 }
 0x277   : > { %v889_v52 = vadd.f32 %v5464_v43, %v874_v49  ;;  %v888_v54 = vadd.f32 %v5467_v44, %v873_v50 }
 0x279   : > { %v891_v56 = vpack.c.bf16 %v889_v52, %v887_v51  ;;  %v5480_v57 = vpack.c.bf16 %v888_v54, %v886_v53 }
 0x27b   : > { %1532 = vmatprep.mubr.bf16.mxu1 %v891_v56  ;;  %1618 = vmatprep.mubr.bf16.mxu0 %v891_v56 }
 0x27c   : > { %1533 = vmatmul.mubr.bf16.vlgmr.msra.gmra.mrb[0].mxu1 %v5480_v57  ;;  %1619 = vmatmul.mubr.bf16.vlgmr.msra.gmra.mrb[0].mxu0 %v5480_v57 }
 0x27d   : > { %1544 = vmatpush1.bf16.msra.mxu1 %v4092_v55  ;;  %1575 = vmatprep.mubr.bf16.mxu1 %v891_v56 }
 0x27e   : > { %1545 = vmatprep.subr.bf16.mxu1 %v4097_v58  ;;  %3820 = vmatprep.mubr.msk.bf16.mxu0 %vm4772_vm0, %v4771_v24 }
 0x281   : > { %1546 = vmatpush1.bf16.msra.mxu1 %v4095_v59  ;;  %v1000_v59 = vsub.s32 2, %v5445_v32 }
 0x282   : > { %1547 = vmatprep.subr.bf16.mxu1 %v4100_v60  ;;  %v1004_v60 = vsub.s32 3, %v5445_v32 }
 0x285   : > { %1548 = vmatpush1.bf16.msra.mxu1 %v4098_v61  ;;  %v1001_v61 = vrot.slane %v988_v26, %v1000_v59 }
 0x286   : > { %1549 = vmatprep.subr.bf16.mxu1 %v4103_v62 }
 0x289   : > { %1550 = vmatpush1.bf16.msra.mxu1 %v4101_v63  ;;  %v1005_v63 = vrot.slane %v988_v26, %v1004_v60 }
 0x28a   : > { %1551 = vmatprep.subr.bf16.mxu1 %v4106_v0 }
 0x28d   : > { %1552 = vmatpush1.bf16.msra.mxu1 %v4104_v1 }
 0x28e   : > { %1553 = vmatprep.subr.bf16.mxu1 %v4109_v2 }
 0x291   : > { %1554 = vmatpush1.bf16.msra.mxu1 %v4107_v3 }
 0x292   : > { %1555 = vmatprep.subr.bf16.mxu1 %v4112_v4 }
 0x295   : > { %1556 = vmatpush1.bf16.msra.mxu1 %v4110_v5 }
 0x296   : > { %1557 = vmatprep.subr.bf16.mxu1 %v4115_v6 }
 0x299   : > { %1558 = vmatpush1.bf16.msra.mxu1 %v4113_v7 }
 0x29a   : > { %1559 = vmatprep.subr.bf16.mxu1 %v4118_v8 }
 0x29d   : > { %1560 = vmatpush1.bf16.msra.mxu1 %v4116_v9  ;;  %v3634_v9 = vld [vmem:[%s5993_s17] ss:$0 sm:$0xff] }
 0x29e   : > { %1561 = vmatprep.subr.bf16.mxu1 %v4121_v10 }
 0x2a1   : > { %1562 = vmatpush1.bf16.msra.mxu1 %v4119_v11 }
 0x2a2   : > { %1563 = vmatprep.subr.bf16.mxu1 %v4124_v12 }
 0x2a5   : > { %1564 = vmatpush1.bf16.msra.mxu1 %v4122_v13 }
 0x2a6   : > { %1565 = vmatprep.subr.bf16.mxu1 %v4127_v14 }
 0x2a9   : > { %1566 = vmatpush1.bf16.msra.mxu1 %v4125_v15 }
 0x2aa   : > { %1567 = vmatprep.subr.bf16.mxu1 %v4130_v16 }
 0x2ad   : > { %1568 = vmatpush1.bf16.msra.mxu1 %v4128_v17 }
 0x2ae   : > { %1569 = vmatprep.subr.bf16.mxu1 %v4133_v18 }
 0x2b1   : > { %1570 = vmatpush1.bf16.msra.mxu1 %v4131_v19 }
 0x2b2   : > { %1571 = vmatprep.subr.bf16.mxu1 %v4136_v20 }
 0x2b5   : > { %1572 = vmatpush1.bf16.msra.mxu1 %v4134_v21 }
 0x2b6   : > { %1573 = vmatprep.subr.bf16.mxu1 %v4139_v22 }
 0x2b9   : > { %1574 = vmatpush1.bf16.msra.mxu1 %v4137_v23 }
 0x2ba   : > { %3830 = vmatprep.subr.bf16.mxu1 %v4771_v24 }
 0x2bc   : > { %1576 = vmatmul.mubr.bf16.vlgmr.msra.gmra.mrb[4].mxu1 %v5480_v57 }
 0x2bd   : > { %3832 = vmatprep.mubr.msk.bf16.mxu1 %vm4772_vm0, %v4771_v24 }
 0x34f   : > { %v1534_v30 = vpop.f32.mrb[0].mxu1  ;;  %v1620_v31 = vpop.f32.mrb[0].mxu0 }
 0x350   : > { %v1536_v37 = vpop.f32.mrb[1].mxu1  ;;  %v1622_v38 = vpop.f32.mrb[1].mxu0  ;;  %v1535_v45 = vadd.f32 %v1534_v30, %v993_v28  ;;  %v1621_v46 = vadd.f32 %v1620_v31, %v1009_v29 }
 0x351   : > { %v1538_v40 = vpop.f32.mrb[2].mxu1  ;;  %v1624_v42 = vpop.f32.mrb[2].mxu0  ;;  %v1537_v51 = vadd.f32 %v1536_v37, %v997_v35  ;;  %v1623_v52 = vadd.f32 %v1622_v38, %v1013_v36 }
 0x352   : > { %v1539_v47 = vadd.f32 %v1538_v40, %v993_v28  ;;  %v1625_v48 = vadd.f32 %v1624_v42, %v1009_v29  ;;  %v1540_v49 = vpop.f32.mrb[3].mxu1  ;;  %v1626_v50 = vpop.f32.mrb[3].mxu0 }
 0x353   : > { %v1541_v53 = vadd.f32 %v1540_v49, %v997_v35  ;;  %v1627_v54 = vadd.f32 %v1626_v50, %v1013_v36 }
 0x354   : > { %v1629_v56 = vpack.c.bf16 %v1539_v47, %v1535_v45  ;;  %v1631_v55 = vpack.c.bf16 %v1625_v48, %v1621_v46 }
 0x355   : > { %v1747_v57 = vpack.c.bf16 %v1541_v53, %v1537_v51  ;;  %v1749_v58 = vpack.c.bf16 %v1627_v54, %v1623_v52 }
 0x38f   : > { %v1577_v62 = vpop.f32.mrb[4].mxu1 }
 0x390   : > { %v1579_v0 = vpop.f32.mrb[5].mxu1  ;;  %v1578_v2 = vadd.f32 %v1577_v62, %v1001_v61  ;;  %v4146_v62 = vld [vmem:[%s5291_s7 + $0x20] ss:$8 sps:$4 sm:$0xff]  }
 0x391   : > { %v1581_v1 = vpop.f32.mrb[6].mxu1  ;;  %v1580_v5 = vadd.f32 %v1579_v0, %v1005_v63  ;;  %v4149_v0 = vld [vmem:[%s5291_s7 + $0x30] ss:$8 sps:$4 sm:$0xff]  }
 0x392   : > { %v1582_v3 = vadd.f32 %v1581_v1, %v1001_v61  ;;  %v1583_v4 = vpop.f32.mrb[7].mxu1  ;;  %v4148_v61 = vld [vmem:[%s5291_s7 + $0x24] ss:$8 sps:$4 sm:$0xff]  }
 0x393   : > { %v1584_v6 = vadd.f32 %v1583_v4, %v1005_v63  ;;  %v4151_v63 = vld [vmem:[%s5291_s7 + $0x34] ss:$8 sps:$4 sm:$0xff]   ;;  %v4154_v1 = vld [vmem:[%s5291_s7 + $0x44] ss:$8 sps:$4 sm:$0xff]   ;;  %v4155_v4 = vld [vmem:[%s5291_s7 + $0x50] ss:$8 sps:$4 sm:$0xff]  }
 0x394   : > { %v1630_v7 = vpack.c.bf16 %v1582_v3, %v1578_v2  ;;  %v4152_v2 = vld [vmem:[%s5291_s7 + $0x40] ss:$8 sps:$4 sm:$0xff]   ;;  %v4157_v3 = vld [vmem:[%s5291_s7 + $0x54] ss:$8 sps:$4 sm:$0xff]  }
 0x395   : > { %v1748_v8 = vpack.c.bf16 %v1584_v6, %v1580_v5  ;;  %v4160_v5 = vld [vmem:[%s5291_s7 + $0x64] ss:$8 sps:$4 sm:$0xff]   ;;  %v4158_v6 = vld [vmem:[%s5291_s7 + $0x60] ss:$8 sps:$4 sm:$0xff]  }
 0x396   : > { %3819 = vmatpush3.bf16.xpose.msra.mxu0 %v1630_v7  ;;  %v4163_v7 = vld [vmem:[%s5291_s7 + $0x74] ss:$8 sps:$4 sm:$0xff]  }
 0x397   : > { %3831 = vmatpush3.bf16.xpose.msra.mxu1 %v1748_v8  ;;  %3824 = vmatprep.subr.bf16.mxu0 %v4771_v24  ;;  %v4161_v8 = vld [vmem:[%s5291_s7 + $0x70] ss:$8 sps:$4 sm:$0xff]  }
 0x398   : > { %3836 = vmatprep.subr.bf16.mxu1 %v4771_v24 }
 0x39d   : > { %3821 = vmatmul.mubr.bf16.vlgmr.msra.gmra.mrb[4].mxu0 %v1629_v56  ;;  %v4140_v56 = vld [vmem:[%s5291_s7] ss:$8 sps:$4 sm:$0xff]  }
 0x39e   : > { %3825 = vmatpush3.bf16.msra.mxu0 %v1631_v55  ;;  %3833 = vmatmul.mubr.bf16.vlgmr.msra.gmra.mrb[8].mxu1 %v1747_v57  ;;  %v4142_v55 = vld [vmem:[%s5291_s7 + $0x4] ss:$8 sps:$4 sm:$0xff]   ;;  %v4145_v57 = vld [vmem:[%s5291_s7 + $0x14] ss:$8 sps:$4 sm:$0xff]  }
 0x39f   : > { %3837 = vmatpush3.bf16.msra.mxu1 %v1749_v58  ;;  %3838 = vmatprep.mubr.msk.bf16.mxu1 %vm4772_vm0, %v4771_v24  ;;  %v4143_v58 = vld [vmem:[%s5291_s7 + $0x10] ss:$8 sps:$4 sm:$0xff]  }
 0x3a0   : > { %3826 = vmatprep.mubr.msk.bf16.mxu0 %vm4772_vm0, %v4771_v24  ;;  %2064 = vmatprep.subr.bf16.mxu1 %v4142_v55 }
 0x470   : > { %v1672_v10 = vpop.f32.mrb[4].mxu0 }
 0x471   : > { %v3822_v11 = vpop.f32.mrb[5].mxu0  ;;  %v1784_v12 = vpop.f32.mrb[8].mxu1  ;;  %v1673_v18 = vadd.f32 %v3634_v9, %v1672_v10  ;;  %v4164_v10 = vld [vmem:[%s5291_s7 + $0x80] ss:$8 sps:$4 sm:$0xff]  }
 0x472   : > { %v1785_v13 = vadd.f32 %v3634_v9, %v1784_v12  ;;  %v1675_v14 = vpop.f32.mrb[6].mxu0  ;;  %v3834_v15 = vpop.f32.mrb[9].mxu1  ;;  %v4169_v11 = vld [vmem:[%s5291_s7 + $0x94] ss:$8 sps:$4 sm:$0xff]   ;;  %v4167_v12 = vld [vmem:[%s5291_s7 + $0x90] ss:$8 sps:$4 sm:$0xff]  }
 0x473   : > { %v3823_v16 = vpop.f32.mrb[7].mxu0  ;;  %v1787_v17 = vpop.f32.mrb[10].mxu1  ;;  %v1676_v22 = vadd.f32 %v3634_v9, %v1675_v14  ;;  %v1680_v24 = vsel %vm1679_vm1, %v1673_v18, -inf  ;;  %v4170_v14 = vld [vmem:[%s5291_s7 + $0xa0] ss:$8 sps:$4 sm:$0xff]  }
 0x474   : > { %v1788_v19 = vadd.f32 %v3634_v9, %v1787_v17  ;;  %v3835_v20 = vpop.f32.mrb[11].mxu1  ;;  %v1791_v21 = vsel %vm1679_vm1, %v1785_v13, -inf  ;;  %v4166_v9 = vld [vmem:[%s5291_s7 + $0x84] ss:$8 sps:$4 sm:$0xff]   ;;  %v4175_v15 = vld [vmem:[%s5291_s7 + $0xb4] ss:$8 sps:$4 sm:$0xff]  }
 0x475   : > { %1792 = vmax.xlane.f32.xlu0 %v1791_v21  ;;  %v1683_v25 = vsel %vm1679_vm1, %v1676_v22, -inf  ;;  %v4173_v16 = vld [vmem:[%s5291_s7 + $0xb0] ss:$8 sps:$4 sm:$0xff]   ;;  %v4178_v17 = vld [vmem:[%s5291_s7 + $0xc4] ss:$8 sps:$4 sm:$0xff]  }
 0x476   : > { %v1794_v23 = vsel %vm1679_vm1, %v1788_v19, -inf  ;;  %v4179_v20 = vld [vmem:[%s5291_s7 + $0xd0] ss:$8 sps:$4 sm:$0xff]   ;;  %v4184_v21 = vld [vmem:[%s5291_s7 + $0xe4] ss:$8 sps:$4 sm:$0xff]  }
 0x477   : > { %1795 = vmax.xlane.f32.xlu1 %v1794_v23  ;;  %v4187_v23 = vld [vmem:[%s5291_s7 + $0xf4] ss:$8 sps:$4 sm:$0xff]  }
 0x479   : > { %1681 = vmax.xlane.f32.xlu0 %v1680_v24  ;;  %v4185_v24 = vld [vmem:[%s5291_s7 + $0xf0] ss:$8 sps:$4 sm:$0xff]  }
 0x47b   : > { %1684 = vmax.xlane.f32.xlu1 %v1683_v25 }
 0x502   : > { %v1793_v26 = vpop.xlane.xlu0 %1792 }
 0x503   : > { %v1797_v27 = vsub.f32 %v1785_v13, %v1793_v26  ;;  %v4172_v13 = vld [vmem:[%s5291_s7 + $0xa4] ss:$8 sps:$4 sm:$0xff]  }
 0x504   : > { %v1796_v28 = vpop.xlane.xlu1 %1795 }
 0x505   : > { %v1799_v29 = vmul.f32 1.442695, %v1797_v27  ;;  %v1798_v30 = vsub.f32 %v1788_v19, %v1796_v28  ;;  %v4181_v19 = vld [vmem:[%s5291_s7 + $0xd4] ss:$8 sps:$4 sm:$0xff]  }
 0x506   : > { %v1682_v31 = vpop.xlane.xlu0 %1681 }
 0x507   : > { %4384 = vpow2.f32 %v1799_v29  ;;  %v1801_v35 = vmul.f32 1.442695, %v1798_v30  ;;  %v1686_v36 = vsub.f32 %v1673_v18, %v1682_v31  ;;  %v4176_v18 = vld [vmem:[%s5291_s7 + $0xc0] ss:$8 sps:$4 sm:$0xff]  }
 0x508   : > { %v1685_v37 = vpop.xlane.xlu1 %1684 }
 0x509   : > { %4386 = vpow2.f32 %v1801_v35  ;;  %v1688_v38 = vmul.f32 1.442695, %v1686_v36  ;;  %v1687_v40 = vsub.f32 %v1676_v22, %v1685_v37  ;;  %v4182_v22 = vld [vmem:[%s5291_s7 + $0xe0] ss:$8 sps:$4 sm:$0xff]  }
 0x50b   : > { %4388 = vpow2.f32 %v1688_v38  ;;  %v1690_v42 = vmul.f32 1.442695, %v1687_v40 }
 0x50d   : > { %4390 = vpow2.f32 %v1690_v42 }
 0x511   : > { %v4385_v45 = vpop.eup %4384 }
 0x512   : > { %v1803_v46 = vsel %vm1679_vm1, %v4385_v45, 0.0 }
 0x513   : > { %v4387_v47 = vpop.eup %4386  ;;  %1804 = vadd.xlane.f32.xlu0 %v1803_v46 }
 0x514   : > { %v1806_v48 = vsel %vm1679_vm1, %v4387_v47, 0.0  ;;  %v1811_v49 = vpack.c.bf16 %v4387_v47, %v4385_v45 }
 0x515   : > { %v4389_v50 = vpop.eup %4388  ;;  %1807 = vadd.xlane.f32.xlu1 %v1806_v48 }
 0x516   : > { %3839 = vmatmul.mubr.msk.bf16.vlgmr.msra.gmra.mrb[12].mxu1 %vm1679_vm1, %v1811_v49  ;;  %v1692_v51 = vsel %vm1679_vm1, %v4389_v50, 0.0 }
 0x517   : > { %v4391_v52 = vpop.eup %4390  ;;  %1693 = vadd.xlane.f32.xlu0 %v1692_v51  ;;  %2065 = vmatpush1.bf16.msra.mxu1 %v4140_v56 }
 0x518   : > { %v1695_v53 = vsel %vm1679_vm1, %v4391_v52, 0.0  ;;  %v1700_v54 = vpack.c.bf16 %v4391_v52, %v4389_v50  ;;  %2066 = vmatprep.subr.bf16.mxu1 %v4145_v57 }
 0x519   : > { %1696 = vadd.xlane.f32.xlu1 %v1695_v53 }
 0x51a   : > { %3827 = vmatmul.mubr.msk.bf16.vlgmr.msra.gmra.mrb[8].mxu0 %vm1679_vm1, %v1700_v54  ;;  %v1892_v54 = vld [vmem:[%s5312_s8] sm:$0x3] }
 0x51b   : > { %2067 = vmatpush1.bf16.msra.mxu1 %v4143_v58  ;;  %v1897_v56 = vrot.slane %v1892_v54, %v5451_v34  ;;  %v1901_v55 = vrot.slane %v1892_v54, %v5448_v33  ;;  %v4236_v54 = vld [vmem:[%s5293_s18 + $0x100] ss:$16 sps:$4 sm:$0xff]  }
 0x51c   : > { %2068 = vmatprep.subr.bf16.mxu1 %v4148_v61 }
 0x51f   : > { %2069 = vmatpush1.bf16.msra.mxu1 %v4146_v62 }
 0x520   : > { %2070 = vmatprep.subr.bf16.mxu1 %v4151_v63 }
 0x523   : > { %2071 = vmatpush1.bf16.msra.mxu1 %v4149_v0  ;;  %v4404_v0 = vld [vmem:[%s5333_s2] sm:$0xff] }
 0x524   : > { %2072 = vmatprep.subr.bf16.mxu1 %v4154_v1 }
 0x527   : > { %2073 = vmatpush1.bf16.msra.mxu1 %v4152_v2 }
 0x528   : > { %2074 = vmatprep.subr.bf16.mxu1 %v4157_v3 }
 0x52b   : > { %2075 = vmatpush1.bf16.msra.mxu1 %v4155_v4  ;;  %v4405_v4 = vld [vmem:[%s5333_s2 + $0x8] sm:$0xff] }
 0x52c   : > { %2076 = vmatprep.subr.bf16.mxu1 %v4160_v5 }
 0x52f   : > { %2077 = vmatpush1.bf16.msra.mxu1 %v4158_v6 }
 0x530   : > { %2078 = vmatprep.subr.bf16.mxu1 %v4163_v7  ;;  %v4406_v7 = vld [vmem:[%s5333_s2 + $0x10] sm:$0xff] }
 0x533   : > { %2079 = vmatpush1.bf16.msra.mxu1 %v4161_v8 }
 0x534   : > { %2080 = vmatprep.subr.bf16.mxu1 %v4166_v9  ;;  %v4407_v9 = vld [vmem:[%s5333_s2 + $0x18] sm:$0xff] }
 0x537   : > { %2081 = vmatpush1.bf16.msra.mxu1 %v4164_v10 }
 0x538   : > { %2082 = vmatprep.subr.bf16.mxu1 %v4169_v11 }
 0x53b   : > { %2083 = vmatpush1.bf16.msra.mxu1 %v4167_v12 }
 0x53c   : > { %2084 = vmatprep.subr.bf16.mxu1 %v4172_v13  ;;  %v4188_v13 = vld [vmem:[%s5293_s18] ss:$16 sps:$4 sm:$0xff]  }
 0x53f   : > { %2085 = vmatpush1.bf16.msra.mxu1 %v4170_v14  ;;  %v4190_v14 = vld [vmem:[%s5293_s18 + $0x4] ss:$16 sps:$4 sm:$0xff]  }
 0x540   : > { %2086 = vmatprep.subr.bf16.mxu1 %v4175_v15  ;;  %v4191_v15 = vld [vmem:[%s5293_s18 + $0x8] ss:$16 sps:$4 sm:$0xff]   ;;  %2559 = vmatprep.subr.bf16.mxu0 %v4190_v14 }
 0x541   : > { %2560 = vmatpush1.bf16.msra.mxu0 %v4188_v13 }
 0x543   : > { %2087 = vmatpush1.bf16.msra.mxu1 %v4173_v16  ;;  %v4193_v16 = vld [vmem:[%s5293_s18 + $0xc] ss:$16 sps:$4 sm:$0xff]  }
 0x544   : > { %2088 = vmatprep.subr.bf16.mxu1 %v4178_v17  ;;  %v4196_v17 = vld [vmem:[%s5293_s18 + $0x24] ss:$16 sps:$4 sm:$0xff]  }
 0x545   : > { %2561 = vmatprep.subr.bf16.mxu0 %v4196_v17  ;;  %v4253_v17 = vld [vmem:[%s5293_s18 + $0x14c] ss:$16 sps:$4 sm:$0xff]  }
 0x547   : > { %2089 = vmatpush1.bf16.msra.mxu1 %v4176_v18  ;;  %v4199_v18 = vld [vmem:[%s5293_s18 + $0x2c] ss:$16 sps:$4 sm:$0xff]  }
 0x548   : > { %2090 = vmatprep.subr.bf16.mxu1 %v4181_v19  ;;  %v4194_v19 = vld [vmem:[%s5293_s18 + $0x20] ss:$16 sps:$4 sm:$0xff]  }
 0x549   : > { %2562 = vmatpush1.bf16.msra.mxu0 %v4194_v19  ;;  %v4251_v19 = vld [vmem:[%s5293_s18 + $0x148] ss:$16 sps:$4 sm:$0xff]  }
 0x54b   : > { %2091 = vmatpush1.bf16.msra.mxu1 %v4179_v20  ;;  %v4197_v20 = vld [vmem:[%s5293_s18 + $0x28] ss:$16 sps:$4 sm:$0xff]  }
 0x54c   : > { %2092 = vmatprep.subr.bf16.mxu1 %v4184_v21  ;;  %v4202_v21 = vld [vmem:[%s5293_s18 + $0x44] ss:$16 sps:$4 sm:$0xff]  }
 0x54d   : > { %2563 = vmatprep.subr.bf16.mxu0 %v4202_v21  ;;  %v4259_v21 = vld [vmem:[%s5293_s18 + $0x16c] ss:$16 sps:$4 sm:$0xff]  }
 0x54f   : > { %2093 = vmatpush1.bf16.msra.mxu1 %v4182_v22  ;;  %v4205_v22 = vld [vmem:[%s5293_s18 + $0x4c] ss:$16 sps:$4 sm:$0xff]  }
 0x550   : > { %2094 = vmatprep.subr.bf16.mxu1 %v4187_v23  ;;  %v4200_v23 = vld [vmem:[%s5293_s18 + $0x40] ss:$16 sps:$4 sm:$0xff]  }
 0x551   : > { %2564 = vmatpush1.bf16.msra.mxu0 %v4200_v23  ;;  %v4257_v23 = vld [vmem:[%s5293_s18 + $0x168] ss:$16 sps:$4 sm:$0xff]  }
 0x553   : > { %2095 = vmatpush1.bf16.msra.mxu1 %v4185_v24  ;;  %v4203_v24 = vld [vmem:[%s5293_s18 + $0x48] ss:$16 sps:$4 sm:$0xff]  }
 0x554   : > { %2602 = vmatprep.subr.bf16.mxu1 %v4193_v16  ;;  %v4250_v16 = vld [vmem:[%s5293_s18 + $0x144] ss:$16 sps:$4 sm:$0xff]  }
 0x5a0   : > { %v1805_v25 = vpop.xlane.xlu0 %1804 }
 0x5a1   : > { %4392 = vrcp.f32 %v1805_v25  ;;  %v4208_v25 = vld [vmem:[%s5293_s18 + $0x64] ss:$16 sps:$4 sm:$0xff]  }
 0x5a2   : > { %v1808_v26 = vpop.xlane.xlu1 %1807  ;;  %2565 = vmatprep.subr.bf16.mxu0 %v4208_v25  ;;  %v4265_v25 = vld [vmem:[%s5293_s18 + $0x18c] ss:$16 sps:$4 sm:$0xff]  }
 0x5a3   : > { %4394 = vrcp.f32 %v1808_v26  ;;  %v4211_v26 = vld [vmem:[%s5293_s18 + $0x6c] ss:$16 sps:$4 sm:$0xff]  }
 0x5a4   : > { %v1694_v27 = vpop.xlane.xlu0 %1693 }
 0x5a5   : > { %4396 = vrcp.f32 %v1694_v27  ;;  %v4206_v27 = vld [vmem:[%s5293_s18 + $0x60] ss:$16 sps:$4 sm:$0xff]  }
 0x5a6   : > { %v1697_v28 = vpop.xlane.xlu1 %1696  ;;  %2566 = vmatpush1.bf16.msra.mxu0 %v4206_v27  ;;  %v4263_v27 = vld [vmem:[%s5293_s18 + $0x188] ss:$16 sps:$4 sm:$0xff]  }
 0x5a7   : > { %4398 = vrcp.f32 %v1697_v28  ;;  %v4209_v28 = vld [vmem:[%s5293_s18 + $0x68] ss:$16 sps:$4 sm:$0xff]  }
 0x5ab   : > { %v4393_v30 = vpop.eup %4392 }
 0x5ad   : > { %v4395_v35 = vpop.eup %4394 }
 0x5af   : > { %v4397_v45 = vpop.eup %4396 }
 0x5b1   : > { %v4399_v48 = vpop.eup %4398 }
 0x5e9   : > { %v1849_v29 = vpop.f32.mrb[12].mxu1 }
 0x5ea   : > { %v3840_v31 = vpop.f32.mrb[13].mxu1  ;;  %v1856_v37 = vmul.f32 %v4393_v30, %v1849_v29  ;;  %v4214_v29 = vld [vmem:[%s5293_s18 + $0x84] ss:$16 sps:$4 sm:$0xff]   ;;  %v4217_v30 = vld [vmem:[%s5293_s18 + $0x8c] ss:$16 sps:$4 sm:$0xff]  }
 0x5eb   : > { %v1852_v36 = vpop.f32.mrb[14].mxu1  ;;  %v4212_v31 = vld [vmem:[%s5293_s18 + $0x80] ss:$16 sps:$4 sm:$0xff]   ;;  %2567 = vmatprep.subr.bf16.mxu0 %v4214_v29  ;;  %v4271_v29 = vld [vmem:[%s5293_s18 + $0x1ac] ss:$16 sps:$4 sm:$0xff]  }
 0x5ec   : > { %v1857_v38 = vmul.f32 %v4395_v35, %v1852_v36  ;;  %v3841_v40 = vpop.f32.mrb[15].mxu1  ;;  %v4215_v35 = vld [vmem:[%s5293_s18 + $0x88] ss:$16 sps:$4 sm:$0xff]   ;;  %v4220_v36 = vld [vmem:[%s5293_s18 + $0xa4] ss:$16 sps:$4 sm:$0xff]   ;;  %2568 = vmatpush1.bf16.msra.mxu0 %v4212_v31 }
 0x5ed   : > { %v1738_v42 = vpop.f32.mrb[8].mxu0  ;;  %2569 = vmatprep.subr.bf16.mxu0 %v4220_v36  ;;  %v4221_v40 = vld [vmem:[%s5293_s18 + $0xa8] ss:$16 sps:$4 sm:$0xff]   ;;  %v4277_v36 = vld [vmem:[%s5293_s18 + $0x1cc] ss:$16 sps:$4 sm:$0xff]  }
 0x5ee   : > { %v1859_v46 = vpack.c.bf16 %v1857_v38, %v1856_v37  ;;  %v3828_v47 = vpop.f32.mrb[9].mxu0  ;;  %v1745_v50 = vmul.f32 %v4397_v45, %v1738_v42  ;;  %v4223_v37 = vld [vmem:[%s5293_s18 + $0xac] ss:$16 sps:$4 sm:$0xff]   ;;  %v4218_v38 = vld [vmem:[%s5293_s18 + $0xa0] ss:$16 sps:$4 sm:$0xff]  }
 0x5ef   : > { %v1741_v49 = vpop.f32.mrb[10].mxu0  ;;  %v4226_v42 = vld [vmem:[%s5293_s18 + $0xc4] ss:$16 sps:$4 sm:$0xff]   ;;  %v4229_v45 = vld [vmem:[%s5293_s18 + $0xcc] ss:$16 sps:$4 sm:$0xff]  }
 0x5f0   : > { %v1746_v51 = vmul.f32 %v4399_v48, %v1741_v49  ;;  %v3829_v52 = vpop.f32.mrb[11].mxu0  ;;  %2096 = vmatprep.mubr.bf16.mxu1 %v1859_v46  ;;  %2570 = vmatpush1.bf16.msra.mxu0 %v4218_v38  ;;  %v4224_v46 = vld [vmem:[%s5293_s18 + $0xc0] ss:$16 sps:$4 sm:$0xff]   ;;  %v4227_v47 = vld [vmem:[%s5293_s18 + $0xc8] ss:$16 sps:$4 sm:$0xff]  }
 0x5f1   : > { %2571 = vmatprep.subr.bf16.mxu0 %v4226_v42  ;;  %v4232_v48 = vld [vmem:[%s5293_s18 + $0xe4] ss:$16 sps:$4 sm:$0xff]   ;;  %v4235_v49 = vld [vmem:[%s5293_s18 + $0xec] ss:$16 sps:$4 sm:$0xff]   ;;  %v4269_v31 = vld [vmem:[%s5293_s18 + $0x1a8] ss:$16 sps:$4 sm:$0xff]  }
 0x5f2   : > { %v1858_v53 = vpack.c.bf16 %v1746_v51, %v1745_v50  ;;  %v4230_v50 = vld [vmem:[%s5293_s18 + $0xe0] ss:$16 sps:$4 sm:$0xff]   ;;  %v4233_v51 = vld [vmem:[%s5293_s18 + $0xe8] ss:$16 sps:$4 sm:$0xff]   ;;  %v4238_v52 = vld [vmem:[%s5293_s18 + $0x104] ss:$16 sps:$4 sm:$0xff]  }
 0x5f3   : > { %v4275_v38 = vld [vmem:[%s5293_s18 + $0x1c8] ss:$16 sps:$4 sm:$0xff]   ;;  %v4283_v42 = vld [vmem:[%s5293_s18 + $0x1ec] ss:$16 sps:$4 sm:$0xff]  }
 0x5f4   : > { %2097 = vmatmul.mubr.bf16.vlgmr.msra.gmra.mrb[16].mxu1 %v1858_v53  ;;  %2572 = vmatpush1.bf16.msra.mxu0 %v4224_v46  ;;  %v4241_v53 = vld [vmem:[%s5293_s18 + $0x10c] ss:$16 sps:$4 sm:$0xff]   ;;  %v4281_v46 = vld [vmem:[%s5293_s18 + $0x1e8] ss:$16 sps:$4 sm:$0xff]  }
 0x5f5   : > { %2603 = vmatpush1.bf16.msra.mxu1 %v4191_v15  ;;  %2573 = vmatprep.subr.bf16.mxu0 %v4232_v48 }
 0x5f6   : > { %2604 = vmatprep.subr.bf16.mxu1 %v4199_v18  ;;  %v4248_v18 = vld [vmem:[%s5293_s18 + $0x140] ss:$16 sps:$4 sm:$0xff]  }
 0x5f8   : > { %2574 = vmatpush1.bf16.msra.mxu0 %v4230_v50 }
 0x5f9   : > { %2605 = vmatpush1.bf16.msra.mxu1 %v4197_v20  ;;  %2575 = vmatprep.subr.bf16.mxu0 %v4238_v52  ;;  %v4256_v20 = vld [vmem:[%s5293_s18 + $0x164] ss:$16 sps:$4 sm:$0xff]  }
 0x5fa   : > { %2606 = vmatprep.subr.bf16.mxu1 %v4205_v22  ;;  %v4254_v22 = vld [vmem:[%s5293_s18 + $0x160] ss:$16 sps:$4 sm:$0xff]  }
 0x5fc   : > { %2576 = vmatpush1.bf16.msra.mxu0 %v4236_v54 }
 0x5fd   : > { %2607 = vmatpush1.bf16.msra.mxu1 %v4203_v24  ;;  %v4262_v24 = vld [vmem:[%s5293_s18 + $0x184] ss:$16 sps:$4 sm:$0xff]  }
 0x5fe   : > { %2608 = vmatprep.subr.bf16.mxu1 %v4211_v26  ;;  %v4260_v26 = vld [vmem:[%s5293_s18 + $0x180] ss:$16 sps:$4 sm:$0xff]  }
 0x601   : > { %2609 = vmatpush1.bf16.msra.mxu1 %v4209_v28  ;;  %v4268_v28 = vld [vmem:[%s5293_s18 + $0x1a4] ss:$16 sps:$4 sm:$0xff]  }
 0x602   : > { %2610 = vmatprep.subr.bf16.mxu1 %v4217_v30  ;;  %v4266_v30 = vld [vmem:[%s5293_s18 + $0x1a0] ss:$16 sps:$4 sm:$0xff]  }
 0x605   : > { %2611 = vmatpush1.bf16.msra.mxu1 %v4215_v35  ;;  %v4274_v35 = vld [vmem:[%s5293_s18 + $0x1c4] ss:$16 sps:$4 sm:$0xff]  }
 0x606   : > { %2612 = vmatprep.subr.bf16.mxu1 %v4223_v37  ;;  %v4272_v37 = vld [vmem:[%s5293_s18 + $0x1c0] ss:$16 sps:$4 sm:$0xff]  }
 0x609   : > { %2613 = vmatpush1.bf16.msra.mxu1 %v4221_v40  ;;  %v4280_v40 = vld [vmem:[%s5293_s18 + $0x1e4] ss:$16 sps:$4 sm:$0xff]  }
 0x60a   : > { %2614 = vmatprep.subr.bf16.mxu1 %v4229_v45  ;;  %v4278_v45 = vld [vmem:[%s5293_s18 + $0x1e0] ss:$16 sps:$4 sm:$0xff]  }
 0x60d   : > { %2615 = vmatpush1.bf16.msra.mxu1 %v4227_v47  ;;  %v4286_v47 = vld [vmem:[%s5329_s28 + $0x4] ss:$8 sps:$4 sm:$0xff]  }
 0x60e   : > { %2616 = vmatprep.subr.bf16.mxu1 %v4235_v49 }
 0x611   : > { %2617 = vmatpush1.bf16.msra.mxu1 %v4233_v51 }
 0x612   : > { %2618 = vmatprep.subr.bf16.mxu1 %v4241_v53 }
 0x6c7   : > { %v2098_v57 = vpop.f32.mrb[16].mxu1 }
 0x6c8   : > { %v2099_v58 = vadd.f32 %v2098_v57, %v1897_v56  ;;  %v2100_v61 = vpop.f32.mrb[17].mxu1  ;;  %v4247_v57 = vld [vmem:[%s5293_s18 + $0x12c] ss:$16 sps:$4 sm:$0xff]  }
 0x6c9   : > { %v2101_v62 = vadd.f32 %v2100_v61, %v1901_v55  ;;  %v2102_v63 = vpop.f32.mrb[18].mxu1  ;;  %v4245_v61 = vld [vmem:[%s5293_s18 + $0x128] ss:$16 sps:$4 sm:$0xff]  }
 0x6ca   : > { %v5581_v1 = vadd.f32 %v4404_v0, %v2099_v58  ;;  %v2103_v2 = vadd.f32 %v2102_v63, %v1897_v56  ;;  %v2104_v3 = vpop.f32.mrb[19].mxu1  ;;  %v4239_v56 = vld [vmem:[%s5293_s18 + $0x108] ss:$16 sps:$4 sm:$0xff]   ;;  %v4242_v58 = vld [vmem:[%s5293_s18 + $0x120] ss:$16 sps:$4 sm:$0xff]  }
 0x6cb   : > { %v5584_v5 = vadd.f32 %v4405_v4, %v2101_v62  ;;  %v2105_v6 = vadd.f32 %v2104_v3, %v1901_v55  ;;  %v4244_v55 = vld [vmem:[%s5293_s18 + $0x124] ss:$16 sps:$4 sm:$0xff]   ;;  %2619 = vmatpush1.bf16.msra.mxu1 %v4239_v56 }
 0x6cc   : > { %v5587_v8 = vadd.f32 %v4406_v7, %v2103_v2  ;;  %2577 = vmatprep.subr.bf16.mxu0 %v4244_v55  ;;  %2620 = vmatprep.subr.bf16.mxu1 %v4247_v57 }
 0x6cd   : > { %v5590_v10 = vadd.f32 %v4407_v9, %v2105_v6  ;;  %v2111_v11 = vadd.f32 %v5584_v5, %v5581_v1  ;;  %2578 = vmatpush1.bf16.msra.mxu0 %v4242_v58 }
 0x6ce   : > { %2579 = vmatprep.subr.bf16.mxu0 %v4250_v16  ;;  %v4296_v16 = vld [vmem:[%s5329_s28 + $0x40] ss:$8 sps:$4 sm:$0xff]  }
 0x6cf   : > { %2112 = vadd.xlane.f32.xlu0 %v2111_v11  ;;  %v2114_v12 = vadd.f32 %v5590_v10, %v5587_v8  ;;  %2621 = vmatpush1.bf16.msra.mxu1 %v4245_v61 }
 0x6d0   : > { %2622 = vmatprep.subr.bf16.mxu1 %v4253_v17  ;;  %v4301_v17 = vld [vmem:[%s5329_s28 + $0x54] ss:$8 sps:$4 sm:$0xff]  }
 0x6d1   : > { %2115 = vadd.xlane.f32.xlu1 %v2114_v12  ;;  %2580 = vmatpush1.bf16.msra.mxu0 %v4248_v18  ;;  %v4299_v18 = vld [vmem:[%s5329_s28 + $0x50] ss:$8 sps:$4 sm:$0xff]  }
 0x6d2   : > { %2581 = vmatprep.subr.bf16.mxu0 %v4256_v20  ;;  %v4302_v20 = vld [vmem:[%s5329_s28 + $0x60] ss:$8 sps:$4 sm:$0xff]  }
 0x6d3   : > { %2623 = vmatpush1.bf16.msra.mxu1 %v4251_v19  ;;  %v4304_v19 = vld [vmem:[%s5329_s28 + $0x64] ss:$8 sps:$4 sm:$0xff]  }
 0x6d4   : > { %2624 = vmatprep.subr.bf16.mxu1 %v4259_v21  ;;  %v4307_v21 = vld [vmem:[%s5329_s28 + $0x74] ss:$8 sps:$4 sm:$0xff]  }
 0x6d5   : > { %2582 = vmatpush1.bf16.msra.mxu0 %v4254_v22  ;;  %v4305_v22 = vld [vmem:[%s5329_s28 + $0x70] ss:$8 sps:$4 sm:$0xff]  }
 0x6d6   : > { %2583 = vmatprep.subr.bf16.mxu0 %v4262_v24  ;;  %v4308_v24 = vld [vmem:[%s5329_s28 + $0x80] ss:$8 sps:$4 sm:$0xff]  }
 0x6d7   : > { %2625 = vmatpush1.bf16.msra.mxu1 %v4257_v23  ;;  %v4310_v23 = vld [vmem:[%s5329_s28 + $0x84] ss:$8 sps:$4 sm:$0xff]  }
 0x6d8   : > { %2626 = vmatprep.subr.bf16.mxu1 %v4265_v25  ;;  %v4313_v25 = vld [vmem:[%s5329_s28 + $0x94] ss:$8 sps:$4 sm:$0xff]  }
 0x6d9   : > { %2584 = vmatpush1.bf16.msra.mxu0 %v4260_v26  ;;  %v4311_v26 = vld [vmem:[%s5329_s28 + $0x90] ss:$8 sps:$4 sm:$0xff]  }
 0x6da   : > { %2585 = vmatprep.subr.bf16.mxu0 %v4268_v28  ;;  %v4314_v28 = vld [vmem:[%s5329_s28 + $0xa0] ss:$8 sps:$4 sm:$0xff]  }
 0x6db   : > { %2627 = vmatpush1.bf16.msra.mxu1 %v4263_v27  ;;  %v4316_v27 = vld [vmem:[%s5329_s28 + $0xa4] ss:$8 sps:$4 sm:$0xff]  }
 0x6dc   : > { %2628 = vmatprep.subr.bf16.mxu1 %v4271_v29  ;;  %v4319_v29 = vld [vmem:[%s5329_s28 + $0xb4] ss:$8 sps:$4 sm:$0xff]  }
 0x6dd   : > { %2586 = vmatpush1.bf16.msra.mxu0 %v4266_v30  ;;  %v4317_v30 = vld [vmem:[%s5329_s28 + $0xb0] ss:$8 sps:$4 sm:$0xff]  }
 0x6de   : > { %2587 = vmatprep.subr.bf16.mxu0 %v4274_v35  ;;  %v4320_v35 = vld [vmem:[%s5329_s28 + $0xc0] ss:$8 sps:$4 sm:$0xff]  }
 0x6df   : > { %2629 = vmatpush1.bf16.msra.mxu1 %v4269_v31  ;;  %v4322_v31 = vld [vmem:[%s5329_s28 + $0xc4] ss:$8 sps:$4 sm:$0xff]  }
 0x6e0   : > { %2630 = vmatprep.subr.bf16.mxu1 %v4277_v36  ;;  %v4325_v36 = vld [vmem:[%s5329_s28 + $0xd4] ss:$8 sps:$4 sm:$0xff]  }
 0x6e1   : > { %2588 = vmatpush1.bf16.msra.mxu0 %v4272_v37  ;;  %v4323_v37 = vld [vmem:[%s5329_s28 + $0xd0] ss:$8 sps:$4 sm:$0xff]  }
 0x6e2   : > { %2589 = vmatprep.subr.bf16.mxu0 %v4280_v40  ;;  %v4326_v40 = vld [vmem:[%s5329_s28 + $0xe0] ss:$8 sps:$4 sm:$0xff]  }
 0x6e3   : > { %2631 = vmatpush1.bf16.msra.mxu1 %v4275_v38  ;;  %v4328_v38 = vld [vmem:[%s5329_s28 + $0xe4] ss:$8 sps:$4 sm:$0xff]  }
 0x6e4   : > { %2632 = vmatprep.subr.bf16.mxu1 %v4283_v42  ;;  %v4331_v42 = vld [vmem:[%s5329_s28 + $0xf4] ss:$8 sps:$4 sm:$0xff]  }
 0x6e5   : > { %2590 = vmatpush1.bf16.msra.mxu0 %v4278_v45  ;;  %v4329_v45 = vld [vmem:[%s5329_s28 + $0xf0] ss:$8 sps:$4 sm:$0xff]  }
 0x6e6   : > { %3053 = vmatprep.subr.bf16.mxu0 %v4286_v47  ;;  %v2217_v47 = vld [vmem:[%s5322_s23] sm:$0xf] }
 0x6e7   : > { %2633 = vmatpush1.bf16.msra.mxu1 %v4281_v46  ;;  %v4334_v46 = vld [vmem:[%s5329_s28 + $0x104] ss:$8 sps:$4 sm:$0xff]  }
 0x75c   : > { %v2113_v62 = vpop.xlane.xlu0 %2112 }
 0x75d   : > { %v2117_v63 = vmul.f32 0.00390625, %v2113_v62 }
 0x75e   : > { %v2116_v0 = vpop.xlane.xlu1 %2115 }
 0x75f   : > { %v5637_v2 = vsub.f32 %v5581_v1, %v2117_v63  ;;  %v5640_v3 = vsub.f32 %v5584_v5, %v2117_v63  ;;  %v2118_v4 = vmul.f32 0.00390625, %v2116_v0 }
 0x761   : > { %v5643_v6 = vsub.f32 %v5587_v8, %v2118_v4  ;;  %v5646_v7 = vsub.f32 %v5590_v10, %v2118_v4  ;;  %v2123_v9 = vmul.f32 %v5637_v2, %v5637_v2  ;;  %v2124_v11 = vmul.f32 %v5640_v3, %v5640_v3 }
 0x763   : > { %v2127_v12 = vadd.f32 %v2124_v11, %v2123_v9  ;;  %v2125_v13 = vmul.f32 %v5643_v6, %v5643_v6  ;;  %v2126_v14 = vmul.f32 %v5646_v7, %v5646_v7 }
 0x765   : > { %2128 = vadd.xlane.f32.xlu0 %v2127_v12  ;;  %v2130_v15 = vadd.f32 %v2126_v14, %v2125_v13  ;;  %v4284_v12 = vld [vmem:[%s5329_s28] ss:$8 sps:$4 sm:$0xff]   ;;  %v4289_v13 = vld [vmem:[%s5329_s28 + $0x14] ss:$8 sps:$4 sm:$0xff]   ;;  %v4293_v14 = vld [vmem:[%s5329_s28 + $0x30] ss:$8 sps:$4 sm:$0xff]  }
 0x767   : > { %2131 = vadd.xlane.f32.xlu1 %v2130_v15  ;;  %v4298_v15 = vld [vmem:[%s5329_s28 + $0x44] ss:$8 sps:$4 sm:$0xff]  }
 0x7f2   : > { %v2129_v48 = vpop.xlane.xlu0 %2128 }
 0x7f3   : > { %v2133_v49 = vmul.f32 0.00390625, %v2129_v48  ;;  %v2222_v48 = vrot.slane %v2217_v47, %v5451_v34 }
 0x7f4   : > { %v2132_v50 = vpop.xlane.xlu1 %2131 }
 0x7f5   : > { %v2135_v51 = vadd.f32 1e-06, %v2133_v49  ;;  %v2134_v52 = vmul.f32 0.00390625, %v2132_v50  ;;  %v2230_v49 = vrot.slane %v2217_v47, %v1000_v59  ;;  %v2226_v50 = vrot.slane %v2217_v47, %v5448_v33 }
 0x7f7   : > { %4400 = vrsqrt.f32 %v2135_v51  ;;  %v2136_v53 = vadd.f32 1e-06, %v2134_v52  ;;  %v2234_v51 = vrot.slane %v2217_v47, %v1004_v60  ;;  %v4373_v47 = vld [vmem:[%s5329_s28 + $0x1d4] ss:$8 sps:$4 sm:$0xff]  }
 0x7f9   : > { %4402 = vrsqrt.f32 %v2136_v53 }
 0x801   : > { %v4401_v54 = vpop.eup %4400 }
 0x802   : > { %v2139_v56 = vmul.f32 %v4401_v54, %v5637_v2  ;;  %v2140_v55 = vmul.f32 %v4401_v54, %v5640_v3 }
 0x803   : > { %v4403_v57 = vpop.eup %4402 }
 0x804   : > { %v2141_v58 = vmul.f32 %v4403_v57, %v5643_v6  ;;  %v2142_v61 = vmul.f32 %v4403_v57, %v5646_v7  ;;  %v2144_v62 = vmul.f32 %v2140_v55, %v5457_v39  ;;  %v2143_v63 = vmul.f32 %v2139_v56, %v5461_v41 }
 0x806   : > { %v2146_v0 = vmul.f32 %v2142_v61, %v5457_v39  ;;  %v2145_v4 = vmul.f32 %v2141_v58, %v5461_v41  ;;  %v2148_v2 = vadd.f32 %v2144_v62, %v5464_v43  ;;  %v2147_v3 = vadd.f32 %v2143_v63, %v5467_v44  ;;  %v4287_v39 = vld [vmem:[%s5329_s28 + $0x10] ss:$8 sps:$4 sm:$0xff]   ;;  %v4292_v41 = vld [vmem:[%s5329_s28 + $0x24] ss:$8 sps:$4 sm:$0xff]  }
 0x808   : > { %v2150_v9 = vadd.f32 %v2146_v0, %v5464_v43  ;;  %v2149_v6 = vadd.f32 %v2145_v4, %v5467_v44  ;;  %v4290_v43 = vld [vmem:[%s5329_s28 + $0x20] ss:$8 sps:$4 sm:$0xff]   ;;  %v4295_v44 = vld [vmem:[%s5329_s28 + $0x34] ss:$8 sps:$4 sm:$0xff]  }
 0x80a   : > { %v2152_v7 = vpack.c.bf16 %v2150_v9, %v2148_v2  ;;  %v2151_v11 = vpack.c.bf16 %v2149_v6, %v2147_v3 }
 0x80c   : > { %2591 = vmatprep.mubr.bf16.mxu0 %v2152_v7  ;;  %2634 = vmatprep.mubr.bf16.mxu1 %v2152_v7 }
 0x80d   : > { %2592 = vmatmul.mubr.bf16.vlgmr.msra.gmra.mrb[12].mxu0 %v2151_v11  ;;  %2635 = vmatmul.mubr.bf16.vlgmr.msra.gmra.mrb[20].mxu1 %v2151_v11 }
 0x80e   : > { %3054 = vmatpush1.bf16.msra.mxu0 %v4284_v12 }
 0x80f   : > { %3055 = vmatprep.subr.bf16.mxu0 %v4289_v13 }
 0x812   : > { %3056 = vmatpush1.bf16.msra.mxu0 %v4287_v39 }
 0x813   : > { %3057 = vmatprep.subr.bf16.mxu0 %v4292_v41 }
 0x816   : > { %3058 = vmatpush1.bf16.msra.mxu0 %v4290_v43 }
 0x817   : > { %3059 = vmatprep.subr.bf16.mxu0 %v4295_v44 }
 0x81a   : > { %3060 = vmatpush1.bf16.msra.mxu0 %v4293_v14 }
 0x81b   : > { %3061 = vmatprep.subr.bf16.mxu0 %v4298_v15  ;;  %v4332_v15 = vld [vmem:[%s5329_s28 + $0x100] ss:$8 sps:$4 sm:$0xff]  }
 0x81e   : > { %3062 = vmatpush1.bf16.msra.mxu0 %v4296_v16  ;;  %v4337_v16 = vld [vmem:[%s5329_s28 + $0x114] ss:$8 sps:$4 sm:$0xff]  }
 0x81f   : > { %3063 = vmatprep.subr.bf16.mxu0 %v4301_v17  ;;  %v4335_v17 = vld [vmem:[%s5329_s28 + $0x110] ss:$8 sps:$4 sm:$0xff]  }
 0x822   : > { %3064 = vmatpush1.bf16.msra.mxu0 %v4299_v18  ;;  %v4340_v18 = vld [vmem:[%s5329_s28 + $0x124] ss:$8 sps:$4 sm:$0xff]  }
 0x823   : > { %3065 = vmatprep.subr.bf16.mxu0 %v4304_v19  ;;  %v4338_v19 = vld [vmem:[%s5329_s28 + $0x120] ss:$8 sps:$4 sm:$0xff]  }
 0x826   : > { %3066 = vmatpush1.bf16.msra.mxu0 %v4302_v20  ;;  %v4343_v20 = vld [vmem:[%s5329_s28 + $0x134] ss:$8 sps:$4 sm:$0xff]  }
 0x827   : > { %3067 = vmatprep.subr.bf16.mxu0 %v4307_v21  ;;  %v4341_v21 = vld [vmem:[%s5329_s28 + $0x130] ss:$8 sps:$4 sm:$0xff]  }
 0x82a   : > { %3068 = vmatpush1.bf16.msra.mxu0 %v4305_v22  ;;  %v4346_v22 = vld [vmem:[%s5329_s28 + $0x144] ss:$8 sps:$4 sm:$0xff]  }
 0x82b   : > { %3069 = vmatprep.subr.bf16.mxu0 %v4310_v23  ;;  %v4344_v23 = vld [vmem:[%s5329_s28 + $0x140] ss:$8 sps:$4 sm:$0xff]  }
 0x82e   : > { %3070 = vmatpush1.bf16.msra.mxu0 %v4308_v24  ;;  %v4349_v24 = vld [vmem:[%s5329_s28 + $0x154] ss:$8 sps:$4 sm:$0xff]  }
 0x82f   : > { %3071 = vmatprep.subr.bf16.mxu0 %v4313_v25  ;;  %v4347_v25 = vld [vmem:[%s5329_s28 + $0x150] ss:$8 sps:$4 sm:$0xff]  }
 0x832   : > { %3072 = vmatpush1.bf16.msra.mxu0 %v4311_v26  ;;  %v4352_v26 = vld [vmem:[%s5329_s28 + $0x164] ss:$8 sps:$4 sm:$0xff]  }
 0x833   : > { %3073 = vmatprep.subr.bf16.mxu0 %v4316_v27  ;;  %v4350_v27 = vld [vmem:[%s5329_s28 + $0x160] ss:$8 sps:$4 sm:$0xff]  }
 0x836   : > { %3074 = vmatpush1.bf16.msra.mxu0 %v4314_v28  ;;  %v4355_v28 = vld [vmem:[%s5329_s28 + $0x174] ss:$8 sps:$4 sm:$0xff]  }
 0x837   : > { %3075 = vmatprep.subr.bf16.mxu0 %v4319_v29  ;;  %v4353_v29 = vld [vmem:[%s5329_s28 + $0x170] ss:$8 sps:$4 sm:$0xff]  }
 0x83a   : > { %3076 = vmatpush1.bf16.msra.mxu0 %v4317_v30  ;;  %v4358_v30 = vld [vmem:[%s5329_s28 + $0x184] ss:$8 sps:$4 sm:$0xff]  }
 0x83b   : > { %3077 = vmatprep.subr.bf16.mxu0 %v4322_v31  ;;  %v4356_v31 = vld [vmem:[%s5329_s28 + $0x180] ss:$8 sps:$4 sm:$0xff]  }
 0x83e   : > { %3078 = vmatpush1.bf16.msra.mxu0 %v4320_v35  ;;  %v4361_v35 = vld [vmem:[%s5329_s28 + $0x194] ss:$8 sps:$4 sm:$0xff]  }
 0x83f   : > { %3079 = vmatprep.subr.bf16.mxu0 %v4325_v36  ;;  %v4359_v36 = vld [vmem:[%s5329_s28 + $0x190] ss:$8 sps:$4 sm:$0xff]  }
 0x842   : > { %3080 = vmatpush1.bf16.msra.mxu0 %v4323_v37  ;;  %v4364_v37 = vld [vmem:[%s5329_s28 + $0x1a4] ss:$8 sps:$4 sm:$0xff]  }
 0x843   : > { %3081 = vmatprep.subr.bf16.mxu0 %v4328_v38  ;;  %v4362_v38 = vld [vmem:[%s5329_s28 + $0x1a0] ss:$8 sps:$4 sm:$0xff]  }
 0x846   : > { %3082 = vmatpush1.bf16.msra.mxu0 %v4326_v40  ;;  %v4367_v40 = vld [vmem:[%s5329_s28 + $0x1b4] ss:$8 sps:$4 sm:$0xff]  }
 0x847   : > { %3083 = vmatprep.subr.bf16.mxu0 %v4331_v42  ;;  %v4365_v42 = vld [vmem:[%s5329_s28 + $0x1b0] ss:$8 sps:$4 sm:$0xff]  }
 0x84a   : > { %3084 = vmatpush1.bf16.msra.mxu0 %v4329_v45  ;;  %v4370_v45 = vld [vmem:[%s5329_s28 + $0x1c4] ss:$8 sps:$4 sm:$0xff]  }
 0x84b   : > { %3096 = vmatprep.subr.bf16.mxu0 %v4334_v46  ;;  %v4368_v46 = vld [vmem:[%s5329_s28 + $0x1c0] ss:$8 sps:$4 sm:$0xff]  }
 0x8e0   : > { %v2593_v52 = vpop.f32.mrb[12].mxu0  ;;  %v2636_v53 = vpop.f32.mrb[20].mxu1 }
 0x8e1   : > { %v2594_v54 = vadd.f32 %v2593_v52, %v2222_v48  ;;  %v2637_v56 = vadd.f32 %v2636_v53, %v2230_v49  ;;  %v2595_v55 = vpop.f32.mrb[13].mxu0  ;;  %v2638_v57 = vpop.f32.mrb[21].mxu1  ;;  %v4377_v52 = vld [vmem:[%s5329_s28 + $0x1f0] ss:$8 sps:$4 sm:$0xff]  }
 0x8e2   : > { %v2596_v58 = vadd.f32 %v2595_v55, %v2226_v50  ;;  %v2639_v61 = vadd.f32 %v2638_v57, %v2234_v51  ;;  %v2597_v62 = vpop.f32.mrb[14].mxu0  ;;  %v2640_v63 = vpop.f32.mrb[22].mxu1  ;;  %v2721_v53 = vld [vmem:[%s5327_s6] sm:$0x3] }
 0x8e3   : > { %v2598_v0 = vadd.f32 %v2597_v62, %v2222_v48  ;;  %v2641_v4 = vadd.f32 %v2640_v63, %v2230_v49  ;;  %v2599_v2 = vpop.f32.mrb[15].mxu0  ;;  %v2642_v59 = vpop.f32.mrb[23].mxu1  ;;  %v2645_v32 = vmax.f32 %v2594_v54, 0.0  ;;  %v2647_v60 = vmax.f32 %v2637_v56, 0.0  ;;  %v4371_v48 = vld [vmem:[%s5329_s28 + $0x1d0] ss:$8 sps:$4 sm:$0xff]  }
 0x8e4   : > { %v2600_v9 = vadd.f32 %v2599_v2, %v2226_v50  ;;  %v2643_v3 = vadd.f32 %v2642_v59, %v2234_v51  ;;  %v2646_v11 = vmax.f32 %v2596_v58, 0.0  ;;  %v2648_v12 = vmax.f32 %v2639_v61, 0.0  ;;  %v4376_v49 = vld [vmem:[%s5329_s28 + $0x1e4] ss:$8 sps:$4 sm:$0xff]   ;;  %v4374_v50 = vld [vmem:[%s5329_s28 + $0x1e0] ss:$8 sps:$4 sm:$0xff]  }
 0x8e5   : > { %v2649_v6 = vmax.f32 %v2598_v0, 0.0  ;;  %v2651_v7 = vmax.f32 %v2641_v4, 0.0  ;;  %v4379_v51 = vld [vmem:[%s5329_s28 + $0x1f4] ss:$8 sps:$4 sm:$0xff]   ;;  %v2726_v54 = vrot.slane %v2721_v53, %v5451_v34  ;;  %v2730_v56 = vrot.slane %v2721_v53, %v5448_v33 }
 0x8e6   : > { %v2650_v13 = vmax.f32 %v2600_v9, 0.0  ;;  %v2652_v39 = vmax.f32 %v2643_v3, 0.0 }
 0x8e7   : > { %v2653_v41 = vpack.c.bf16 %v2649_v6, %v2645_v32  ;;  %v5732_v43 = vpack.c.bf16 %v2651_v7, %v2647_v60 }
 0x8e8   : > { %v2654_v44 = vpack.c.bf16 %v2650_v13, %v2646_v11  ;;  %v2656_v14 = vpack.c.bf16 %v2652_v39, %v2648_v12 }
 0x8ea   : > { %3085 = vmatprep.mubr.bf16.mxu0 %v2654_v44 }
 0x8eb   : > { %3086 = vmatmul.mubr.bf16.vlgmr.msra.gmra.mrb[16].mxu0 %v2653_v41 }
 0x8ec   : > { %3097 = vmatpush1.bf16.msra.mxu0 %v4332_v15  ;;  %3128 = vmatprep.mubr.bf16.mxu0 %v2656_v14 }
 0x8ed   : > { %3098 = vmatprep.subr.bf16.mxu0 %v4337_v16 }
 0x8f0   : > { %3099 = vmatpush1.bf16.msra.mxu0 %v4335_v17 }
 0x8f1   : > { %3100 = vmatprep.subr.bf16.mxu0 %v4340_v18 }
 0x8f4   : > { %3101 = vmatpush1.bf16.msra.mxu0 %v4338_v19 }
 0x8f5   : > { %3102 = vmatprep.subr.bf16.mxu0 %v4343_v20 }
 0x8f8   : > { %3103 = vmatpush1.bf16.msra.mxu0 %v4341_v21  ;;  %v3151_v21 = vld [vmem:[%s5995_s13] sm:$0x3] (!%p3797_p1) }
 0x8f9   : > { %3104 = vmatprep.subr.bf16.mxu0 %v4346_v22  ;;  %v3152_v22 = vld [vmem:[%s5996_s16] sm:$0x3] (!%p3797_p1) }
 0x8fc   : > { %3105 = vmatpush1.bf16.msra.mxu0 %v4344_v23  ;;  %v3189_v23 = vrot.slane (!%p3797_p1), %v3151_v21, %v5451_v34 }
 0x8fd   : > { %3106 = vmatprep.subr.bf16.mxu0 %v4349_v24  ;;  %v3193_v24 = vrot.slane (!%p3797_p1), %v3151_v21, %v5448_v33 }
 0x900   : > { %3107 = vmatpush1.bf16.msra.mxu0 %v4347_v25 }
 0x901   : > { %3108 = vmatprep.subr.bf16.mxu0 %v4352_v26 }
 0x904   : > { %3109 = vmatpush1.bf16.msra.mxu0 %v4350_v27 }
 0x905   : > { %3110 = vmatprep.subr.bf16.mxu0 %v4355_v28  ;;  %v3204_v28 = vrot.slane (!%p3797_p1), %v3152_v22, %v5451_v34 }
 0x908   : > { %3111 = vmatpush1.bf16.msra.mxu0 %v4353_v29  ;;  %v3208_v29 = vrot.slane (!%p3797_p1), %v3152_v22, %v5448_v33 }
 0x909   : > { %3112 = vmatprep.subr.bf16.mxu0 %v4358_v30 }
 0x90c   : > { %3113 = vmatpush1.bf16.msra.mxu0 %v4356_v31 }
 0x90d   : > { %3114 = vmatprep.subr.bf16.mxu0 %v4361_v35 }
 0x910   : > { %3115 = vmatpush1.bf16.msra.mxu0 %v4359_v36 }
 0x911   : > { %3116 = vmatprep.subr.bf16.mxu0 %v4364_v37 }
 0x914   : > { %3117 = vmatpush1.bf16.msra.mxu0 %v4362_v38 }
 0x915   : > { %3118 = vmatprep.subr.bf16.mxu0 %v4367_v40 }
 0x918   : > { %3119 = vmatpush1.bf16.msra.mxu0 %v4365_v42 }
 0x919   : > { %3120 = vmatprep.subr.bf16.mxu0 %v4370_v45 }
 0x91c   : > { %3121 = vmatpush1.bf16.msra.mxu0 %v4368_v46 }
 0x91d   : > { %3122 = vmatprep.subr.bf16.mxu0 %v4373_v47 }
 0x920   : > { %3123 = vmatpush1.bf16.msra.mxu0 %v4371_v48 }
 0x921   : > { %3124 = vmatprep.subr.bf16.mxu0 %v4376_v49 }
 0x924   : > { %3125 = vmatpush1.bf16.msra.mxu0 %v4374_v50 }
 0x925   : > { %3126 = vmatprep.subr.bf16.mxu0 %v4379_v51 }
 0x928   : > { %3127 = vmatpush1.bf16.msra.mxu0 %v4377_v52 }
 0x92b   : > { %3129 = vmatmul.mubr.bf16.vlgmr.msra.gmra.mrb[16].mxu0 %v5732_v43 }
 0x9fe   : > { %v3130_v55 = vpop.f32.mrb[16].mxu0 }
 0x9ff   : > { %v3842_v57 = vadd.f32 %v3130_v55, %v2726_v54  ;;  %v3132_v58 = vpop.f32.mrb[17].mxu0 }
 0xa00   : > { %v3843_v61 = vadd.f32 %v3132_v58, %v2730_v56  ;;  %v3134_v62 = vpop.f32.mrb[18].mxu0  ;;  %3150 = sbr.rel (%p3797_p1) target bundleno = 2884 (0xb44), region = 112 }
 0xa01   : > { %v3139_v63 = vadd.f32 %v3842_v57, %v5581_v1  ;;  %v3844_v0 = vadd.f32 %v3134_v62, %v2726_v54  ;;  %v3136_v4 = vpop.f32.mrb[19].mxu0 }
 0xa02   : > { %v3140_v2 = vadd.f32 %v3843_v61, %v5584_v5  ;;  %v3845_v59 = vadd.f32 %v3136_v4, %v2730_v56 }
 0xa03   : > { %3143 = vst [vmem:[%s5333_s2] sm:$0xff] %v3139_v63  ;;  %v3141_v9 = vadd.f32 %v3844_v0, %v5587_v8 }
 0xa04   : > { %3144 = vst [vmem:[%s5333_s2 + $0x8] sm:$0xff] %v3140_v2  ;;  %v3142_v3 = vadd.f32 %v3845_v59, %v5590_v10  ;;  %v3153_v32 = vadd.f32 (!%p3797_p1), %v3140_v2, %v3139_v63 }
 0xa05   : > { %3145 = vst [vmem:[%s5333_s2 + $0x10] sm:$0xff] %v3141_v9 }
 0xa06   : > { %3146 = vst [vmem:[%s5333_s2 + $0x18] sm:$0xff] %v3142_v3  ;;  %3154 = vadd.xlane.f32.xlu0 (!%p3797_p1), %v3153_v32  ;;  %v3156_v60 = vadd.f32 (!%p3797_p1), %v3142_v3, %v3141_v9 }
 0xa0a   : > { %3157 = vadd.xlane.f32.xlu0 %v3156_v60 }
 0xa93   : > { %v3155_v1 = vpop.xlane.xlu0 %3154 }
 0xa94   : > { %v3159_v6 = vmul.f32 0.00390625, %v3155_v1 }
 0xa96   : > { %v3161_v7 = vsub.f32 %v3139_v63, %v3159_v6  ;;  %v3162_v5 = vsub.f32 %v3140_v2, %v3159_v6 }
 0xa97   : > { %v3158_v11 = vpop.xlane.xlu0 %3157 }
 0xa98   : > { %v3160_v12 = vmul.f32 0.00390625, %v3158_v11  ;;  %v3165_v13 = vmul.f32 %v3161_v7, %v3161_v7  ;;  %v3166_v8 = vmul.f32 %v3162_v5, %v3162_v5 }
 0xa9a   : > { %v3163_v39 = vsub.f32 %v3141_v9, %v3160_v12  ;;  %v3164_v41 = vsub.f32 %v3142_v3, %v3160_v12  ;;  %v3169_v10 = vadd.f32 %v3166_v8, %v3165_v13 }
 0xa9c   : > { %3170 = vadd.xlane.f32.xlu1 %v3169_v10  ;;  %v3167_v43 = vmul.f32 %v3163_v39, %v3163_v39  ;;  %v3168_v44 = vmul.f32 %v3164_v41, %v3164_v41 }
 0xa9e   : > { %v3172_v14 = vadd.f32 %v3168_v44, %v3167_v43 }
 0xaa0   : > { %3173 = vadd.xlane.f32.xlu1 %v3172_v14 }
 0xb29   : > { %v3171_v15 = vpop.xlane.xlu1 %3170 }
 0xb2a   : > { %v3175_v16 = vmul.f32 0.00390625, %v3171_v15 }
 0xb2c   : > { %v3177_v17 = vadd.f32 1e-06, %v3175_v16 }
 0xb2d   : > { %v3174_v18 = vpop.xlane.xlu1 %3173 }
 0xb2e   : > { %4408 = vrsqrt.f32 %v3177_v17  ;;  %v3176_v19 = vmul.f32 0.00390625, %v3174_v18 }
 0xb30   : > { %v3178_v20 = vadd.f32 1e-06, %v3176_v19 }
 0xb32   : > { %4410 = vrsqrt.f32 %v3178_v20 }
 0xb38   : > { %v4409_v25 = vpop.eup %4408 }
 0xb39   : > { %v3181_v26 = vmul.f32 %v4409_v25, %v3161_v7  ;;  %v3182_v27 = vmul.f32 %v4409_v25, %v3162_v5 }
 0xb3b   : > { %v3196_v30 = vmul.f32 %v3189_v23, %v3181_v26  ;;  %v3197_v31 = vmul.f32 %v3193_v24, %v3182_v27 }
 0xb3c   : > { %v4411_v35 = vpop.eup %4410 }
 0xb3d   : > { %v3211_v36 = vadd.f32 %v3204_v28, %v3196_v30  ;;  %v3212_v37 = vadd.f32 %v3208_v29, %v3197_v31  ;;  %v3183_v38 = vmul.f32 %v4411_v35, %v3163_v39  ;;  %v3184_v40 = vmul.f32 %v4411_v35, %v3164_v41 }
 0xb3f   : > { %3215 = vst [vmem:[%s5333_s2] sm:$0xff] %v3211_v36  ;;  %3216 = vst [vmem:[%s5333_s2 + $0x8] sm:$0xff] %v3212_v37  ;;  %v3198_v42 = vmul.f32 %v3189_v23, %v3183_v38  ;;  %v3199_v45 = vmul.f32 %v3193_v24, %v3184_v40 }
 0xb41   : > { %v3213_v46 = vadd.f32 %v3204_v28, %v3198_v42  ;;  %v3214_v47 = vadd.f32 %v3208_v29, %v3199_v45 }
 0xb43   : > { %3217 = vst [vmem:[%s5333_s2 + $0x10] sm:$0xff] %v3213_v46  ;;  %3218 = vst [vmem:[%s5333_s2 + $0x18] sm:$0xff] %v3214_v47 }
 0xb44 PF: > { %s5997_s9 = sld [smem:[#allocation26_spill]]  ;;  %s5998_s19 = sld [smem:[#allocation35_spill]] }
 0xb45   : > { %s5999_s18 = sld [smem:[#allocation52_spill]]  ;;  %s3233_s29 = sshll.u32 %s5333_s2, 4  ;;  %s5799_s29 = int_to_ptr.vmem [resolvable:$true] %s3233_s29 }
 0xb46   : > { %s3220_s15 = scalar_lea.sflag [#allocation4], %s5257_s25  ;;  %s4622_s11 = scalar_lea.vmem %s5799_s29, 512 }
 0xb47   : > { %p4623_p5 = scmp.ne.s32.totalorder %s5799_s29, %s4622_s11  ;;  %s4773_s26 = smov [#allocation14]  }
 0xb48   : > { %s4626_s24 = sshll.u32 %s4773_s26, 4  ;;  %s4627_s24 = int_to_ptr.vmem [resolvable:$false] %s4626_s24 }
 0xb49   : > { %s4628_s8 = scalar_lea.vmem %s4627_s24, 1024  ;;  %p4629_p2 = scmp.lt.s32.totalorder %s5799_s29, %s4627_s24 }
 0xb4a   : > { %s3809_s1 = sshll.u32 %s5997_s9, 9  ;;  %p6001_p8 = scmp.ne.s32.totalorder %s5998_s19, 0 }
 0xb4b   : > { %s6000_s6 = smov %s5999_s18  ;;  %s5796_s22 = scalar_lea.hbm %s5999_s18, %s3809_s1 }
 0xb4c   : > { %p4624_p7 = pnand %p4623_p5, %p6001_p8  ;;  %p4630_p12 = scmp.lt.s32.totalorder %s4628_s8, %s4622_s11 }
 0xb4e   : > { %p4625_p4 = pneg %p4624_p7  ;;  %p4631_p3 = por %p4630_p12, %p4629_p2 }
 0xb50   : > { %p4632_p11 = pnand %p4631_p3, %p4625_p4 }
 0xb52   : > { %4635 = shalt.err (!%p4632_p11)
}
 0xb53   : > { %s4636_s12 = scalar_lea.hbm %s5796_s22, 512  ;;  %s4640_s30 = scalar_lea.hbm %s6000_s6, 1024 }
 0xb54   : > { %p4637_p6 = scmp.ne.s32.totalorder %s5796_s22, %s4636_s12  ;;  %p4641_p9 = scmp.lt.u32.totalorder %s5796_s22, %s6000_s6 }
 0xb55   : > { %p4642_p10 = scmp.lt.u32.totalorder %s4640_s30, %s4636_s12  ;;  %p4644_p5 = scmp.lt.u32.totalorder %s4636_s12, %s5796_s22 }
 0xb56   : > { %p4638_p0 = pnand %p4637_p6, %p6001_p8 }
 0xb57   : > { %p4643_p1 = por %p4642_p10, %p4641_p9 }
 0xb58   : > { %p4639_p13 = pneg %p4638_p0 }
 0xb59   : > { %p4645_p7 = por %p4644_p5, %p4643_p1 }
 0xb5b   : > { %p4646_p4 = pnand %p4645_p7, %p4639_p13 }
 0xb5d   : > { %4649 = shalt.err (!%p4646_p4)
}
 0xb5e   : > { %s4774_s3 = smov 256   ;;  %s4775_s10 = smov 16  }
 0xb5f   : > { %3868 = dma.vmem_to_hbm [thread:$0]  (%p6001_p8), %s5799_s29, 512, %s5796_s22, %s3220_s15, %s4774_s3, %s4774_s3, %s4775_s10  }
 0xb60 PF: > { %s6002_s17 = sld [smem:[#allocation29_spill]]  ;;  %s6003_s21 = sld [smem:[#allocation22_spill]] }
 0xb61   : > { %s6004_s23 = sld [smem:[#allocation36_spill]] }
 0xb66   : > { %p3897_p2 = scmp.ge.s32.totalorder %s6002_s17, 2  ;;  %s3248_s28 = sand.u32 1, %s6003_s21  }
 0xb67   : > { %p6005_p12 = scmp.ne.s32.totalorder %s6004_s23, 0  ;;  %s3249_s13 = scalar_lea.sflag [#allocation4], %s3248_s28 }
 0xb69   : > { %p3893_p3 = pnand %p3897_p2, %p6005_p12 }
 0xb6b   : > { %4711 = dma.done.wait (!%p3893_p3), %s3249_s13, 512  }
 0xb6c   : > { %4713 = vsyncadd (!%p3893_p3), %s3249_s13, 4294966784  ;;  %s39_s23 = sadd.s32 1, %s6002_s17   ;;  %s6006_s29 = sld [smem:[#allocation20_spill]] }
 0xb6d   : > { %p36_p11 = scmp.ge.s32.totalorder %s39_s23, 6   ;;  %s6007_s30 = sld [smem:[#allocation21_spill]] }
 0xb6e   : > { %s6008_s15 = sld [smem:[#allocation32_spill]]  ;;  %s6009_s16 = sld [smem:[#allocation23_spill]] }
 0xb6f   : > { %s6010_s17 = sld [smem:[#allocation24_spill]]  ;;  %s6011_s18 = sld [smem:[#allocation37_spill]] }
 0xb70   : > { %s6012_s19 = sld [smem:[#allocation27_spill]]  ;;  %s6013_s20 = sld [smem:[#allocation28_spill]] }
 0xb71   : > { %s6014_s21 = sld [smem:[#allocation30_spill]]  ;;  %s6015_s22 = sld [smem:[#allocation34_spill]] }
 0xb72   :  { %38 = sbr.rel (!%p36_p11) target bundleno = 31 (0x1f), region = 216 }
 0xb79   :  { %3254 = vsyncpa [#allocation3], 1 }
 0xb7a   :  { %3256 = vsyncpa [#allocation3 + $0x1], 1 }
 0xb7b   :  { %3257 = vsyncpa [#allocation6], 1 }
 0xb7c   :  { %3259 = vsyncpa [#allocation6 + $0x1], 1 }
 0xb7d   :  { %3260 = vsyncpa [#allocation9], 1 }
 0xb7e   :  { %3262 = vsyncpa [#allocation9 + $0x1], 1 }
 0xb7f   :  { %3263 = vsyncpa [#allocation12], 1 }
 0xb80   :  { %3265 = vsyncpa [#allocation12 + $0x1], 1 }
 0xb81   :  { %3266 = vsyncpa [#allocation4], 1 }
 0xb82   :  { %3268 = vsyncpa [#allocation4 + $0x1], 1 }

</bundles_post_ra>
